<compile_context>
chip_gen: v7x
topology: tpu7x:2x2x1
jax: 0.10.0
libtpu: 0.0.40
codegen_flags: <defaults>
</compile_context>

<pallas_src>
import functools

import jax
import jax.numpy as jnp
import numpy as np
from jax import lax
from jax.experimental import pallas as pl
from jax.experimental.pallas import tpu as pltpu

NEG_SLOPE = 0.01   # nn.LeakyReLU default
LANE = 128


def _leaky(x):
    return jnp.where(x >= 0, x, NEG_SLOPE * x)


def _round_up(a, b):
    return (a + b - 1) // b * b


# --------------------------------------------------------------- kernel ----

def biconv_kernel(xh_ref, xw_ref,
                  w1h_ref, b1h_ref, w2h_ref, b2h_ref, wlh_ref,
                  w1w_ref, b1w_ref, w2w_ref, b2w_ref, wlw_ref,
                  bout_ref, out_ref, *, rows, tb, nbh, nbw):
    """Grid step (i, sb): batch tile i, spatial-row block sb.

    Each branch: one (rows*tb, C*K) x (C*K, 2*mid) matmul, bias + LeakyReLU,
    one (rows*tb, 2*mid) x (2*mid, mid) matmul, bias + LeakyReLU, then an
    unrolled per-row head accumulate against the VMEM-resident linear weight.
    Both branches are summed in registers and accumulated into the resident
    (tb, OUTP) output block with a single RMW per step.
    """
    sb = pl.program_id(1)

    @pl.when(sb == 0)
    def _init():
        # combined linear_h + linear_w bias (padded lanes are zero)
        out_ref[...] = jnp.broadcast_to(bout_ref[...], out_ref.shape)

    def branch(x_ref, w1_ref, b1_ref, w2_ref, b2_ref, wl_ref, nblk):
        x = x_ref[...]                                           # (rows*tb, C*K) bf16
        t = jnp.dot(x, w1_ref[...],
                    preferred_element_type=jnp.float32) + b1_ref[...]
        t = _leaky(t)                                            # f32
        t = jnp.dot(t.astype(jnp.bfloat16), w2_ref[...],
                    preferred_element_type=jnp.float32) + b2_ref[...]
        t = _leaky(t)                                            # (rows*tb, mid) f32
        base = jnp.minimum(sb, nblk - 1) * rows                  # clamp (H != W safety)
        acc = jnp.zeros(out_ref.shape, jnp.float32)
        for r in range(rows):                                    # static unroll
            tr = t[r * tb:(r + 1) * tb, :].astype(jnp.bfloat16)  # (tb, mid)
            acc = acc + jnp.dot(tr, wl_ref[base + r],
                                preferred_element_type=jnp.float32)
        return acc

    def h_contrib():
        return branch(xh_ref, w1h_ref, b1h_ref, w2h_ref, b2h_ref, wlh_ref, nbh)

    def w_contrib():
        return branch(xw_ref, w1w_ref, b1w_ref, w2w_ref, b2w_ref, wlw_ref, nbw)

    if nbh == nbw:
        # H == W (after padding): no guards, single merged RMW of the output.
        out_ref[...] += h_contrib() + w_contrib()
    else:
        @pl.when(sb < nbh)
        def _h():
            out_ref[...] += h_contrib()

        @pl.when(sb < nbw)
        def _w():
            out_ref[...] += w_contrib()


# -------------------------------------------------- one-time weight prep ----

def prepare_params(params, mid_dim, inp_dim, out_dim):
    """PyTorch-layout weights -> kernel layout: conv kernels flattened +
    transposed, linear weights permuted to (spatial, mid, out), out_dim
    zero-padded to 128 lanes, the two linear biases pre-summed.  Matmul
    operands stored bf16; biases stay f32."""
    C, H, W = inp_dim
    M2 = 2 * mid_dim
    OUTP = _round_up(out_dim, LANE)

    def pad_n(w):  # zero-pad the last (output) dim to OUTP lanes
        pad = [(0, 0)] * (w.ndim - 1) + [(0, OUTP - out_dim)]
        return jnp.pad(w, pad)

    # nn.Linear weight indexed by flattened (mid, spatial) -> (spatial, mid, out)
    wlh = params["lh_w"].reshape(out_dim, mid_dim, H).transpose(2, 1, 0)
    wlw = params["lw_w"].reshape(out_dim, mid_dim, W).transpose(2, 1, 0)
    b_out = pad_n((params["lh_b"] + params["lw_b"]).reshape(1, out_dim))

    return {
        "w1h": params["c1h_w"].reshape(M2, C * W).T.astype(jnp.bfloat16),
        "b1h": params["c1h_b"].reshape(1, M2).astype(jnp.float32),
        "w2h": params["c2h_w"].reshape(mid_dim, M2).T.astype(jnp.bfloat16),
        "b2h": params["c2h_b"].reshape(1, mid_dim).astype(jnp.float32),
        "wlh": pad_n(wlh).astype(jnp.bfloat16),                 # (H, mid, OUTP)
        "w1w": params["c1w_w"].reshape(M2, C * H).T.astype(jnp.bfloat16),
        "b1w": params["c1w_b"].reshape(1, M2).astype(jnp.float32),
        "w2w": params["c2w_w"].reshape(mid_dim, M2).T.astype(jnp.bfloat16),
        "b2w": params["c2w_b"].reshape(1, mid_dim).astype(jnp.float32),
        "wlw": pad_n(wlw).astype(jnp.bfloat16),                 # (W, mid, OUTP)
        "b_out": b_out.astype(jnp.float32),                     # (1, OUTP)
    }


# --------------------------------------------------------------- forward ----

@functools.partial(jax.jit, static_argnames=("out_dim",))
def biconvnet_forward(x, prepped, out_dim):
    B, C, H, W = x.shape
    CW, CH = C * W, C * H
    M2 = prepped["w1h"].shape[1]          # 2 * mid_dim
    mid = prepped["w2h"].shape[1]         # mid_dim
    OUTP = prepped["b_out"].shape[1]      # out_dim rounded up to 128 lanes
    S = max(H, W)

    # ---------------- static tiling decisions (all trace-time ints) --------
    ROWS = 16 if (S % 16 == 0 or S >= 64) else 8          # spatial rows / step
    SBh, SBw = -(-H // ROWS), -(-W // ROWS)
    SB = max(SBh, SBw)
    H_pad, W_pad = SBh * ROWS, SBw * ROWS

    # VMEM budget: resident weights (assume double-buffered), double-buffered
    # bf16 streamed slabs, f32 output block.  Keep headroom under the 48 MiB
    # limit (v7x has 64 MiB physical VMEM).
    weight_bytes = (2 * (CW * M2 + CH * M2 + 2 * M2 * mid)
                    + 2 * (H_pad + W_pad) * mid * OUTP
                    + 4 * (2 * M2 + 2 * mid + OUTP))
    budget = 40 * 2**20
    avail = max(budget - 2 * weight_bytes, 2 * 2**20)
    per_row = 2 * ROWS * (CW + CH) * 2 + 2 * OUTP * 4
    cap = max(8, avail // per_row)

    b8 = _round_up(B, 8)
    TB = max(8, (min(cap, 256, b8) // 8) * 8)
    if b8 >= 16:                       # keep >=2 batch tiles for v7x dual-TC
        TB = min(TB, _round_up((b8 + 1) // 2, 8))
    B_pad = _round_up(B, TB)
    nb = B_pad // TB
    M = ROWS * TB                      # matmul M per step

    # ---------------- wrapper-side relayout (bf16, zero-padded) ------------
    # TODO(synk): the h-branch could be streamed straight from NCHW to skip
    # one relayout when C*W is lane-dense; kept symmetric for simplicity.
    xb = x.astype(jnp.bfloat16)
    xh = jnp.transpose(xb, (2, 0, 1, 3)).reshape(H, B, CW)      # [h, b, c*W+w]
    xh = jnp.pad(xh, ((0, H_pad - H), (0, B_pad - B), (0, 0)))
    xh = (xh.reshape(SBh, ROWS, nb, TB, CW)
            .transpose(2, 0, 1, 3, 4).reshape(nb, SBh, M, CW))
    xw = jnp.transpose(xb, (3, 0, 1, 2)).reshape(W, B, CH)      # [w, b, c*H+h]
    xw = jnp.pad(xw, ((0, W_pad - W), (0, B_pad - B), (0, 0)))
    xw = (xw.reshape(SBw, ROWS, nb, TB, CH)
            .transpose(2, 0, 1, 3, 4).reshape(nb, SBw, M, CH))

    # zero-pad the head weights spatially (padded rows contribute exactly 0)
    wlh = jnp.pad(prepped["wlh"], ((0, H_pad - H), (0, 0), (0, 0)))
    wlw = jnp.pad(prepped["wlw"], ((0, W_pad - W), (0, 0), (0, 0)))

    def stream_spec(sblocks, width):
        if sblocks == SB:
            return pl.BlockSpec((None, None, M, width),
                                lambda i, s: (i, s, 0, 0))
        return pl.BlockSpec((None, None, M, width),
                            lambda i, s, n=sblocks: (i, jnp.minimum(s, n - 1), 0, 0))

    def full_spec(arr):                # VMEM-resident: constant block index
        z = (0,) * arr.ndim
        return pl.BlockSpec(arr.shape, lambda i, s, z=z: z)

    in_specs = [
        stream_spec(SBh, CW), stream_spec(SBw, CH),
        full_spec(prepped["w1h"]), full_spec(prepped["b1h"]),
        full_spec(prepped["w2h"]), full_spec(prepped["b2h"]),
        full_spec(wlh),
        full_spec(prepped["w1w"]), full_spec(prepped["b1w"]),
        full_spec(prepped["w2w"]), full_spec(prepped["b2w"]),
        full_spec(wlw),
        full_spec(prepped["b_out"]),
    ]
    out_specs = pl.BlockSpec((TB, OUTP), lambda i, s: (i, 0))

    flops = 2 * B_pad * (H_pad * (CW * M2 + M2 * mid + mid * OUTP)
                         + W_pad * (CH * M2 + M2 * mid + mid * OUTP))
    bytes_accessed = (int(xh.size) + int(xw.size)) * 2 + weight_bytes + B_pad * OUTP * 4

    out = pl.pallas_call(
        functools.partial(biconv_kernel, rows=ROWS, tb=TB, nbh=SBh, nbw=SBw),
        out_shape=jax.ShapeDtypeStruct((B_pad, OUTP), jnp.float32),
        grid=(nb, SB),
        in_specs=in_specs,
        out_specs=out_specs,
        compiler_params=pltpu.CompilerParams(
            dimension_semantics=("parallel", "arbitrary"),
            vmem_limit_bytes=48 * 1024 * 1024),
        cost_estimate=pl.CostEstimate(
            flops=int(flops), transcendentals=0,
            bytes_accessed=int(bytes_accessed)),
    )(xh, xw,
      prepped["w1h"], prepped["b1h"], prepped["w2h"], prepped["b2h"], wlh,
      prepped["w1w"], prepped["b1w"], prepped["w2w"], prepped["b2w"], wlw,
      prepped["b_out"])

    return out[:B, :out_dim]


# -------------------- parameters (PyTorch-shaped, deterministic) ----------

def init_params(key, mid_dim, inp_dim, out_dim):
    C, H, W = inp_dim
    ks = jax.random.split(key, 12)

    def mk(k, shape, fan_in):
        return (jax.random.normal(k, shape, jnp.float32) / np.sqrt(fan_in)).astype(jnp.float32)

    return {
        "c1h_w": mk(ks[0], (2 * mid_dim, C, 1, W), C * W),
        "c1h_b": mk(ks[1], (2 * mid_dim,), C * W),
        "c2h_w": mk(ks[2], (mid_dim, 2 * mid_dim, 1, 1), 2 * mid_dim),
        "c2h_b": mk(ks[3], (mid_dim,), 2 * mid_dim),
        "lh_w": mk(ks[4], (out_dim, mid_dim * H), mid_dim * H),
        "lh_b": mk(ks[5], (out_dim,), mid_dim * H),
        "c1w_w": mk(ks[6], (2 * mid_dim, C, H, 1), C * H),
        "c1w_b": mk(ks[7], (2 * mid_dim,), C * H),
        "c2w_w": mk(ks[8], (mid_dim, 2 * mid_dim, 1, 1), 2 * mid_dim),
        "c2w_b": mk(ks[9], (mid_dim,), 2 * mid_dim),
        "lw_w": mk(ks[10], (out_dim, mid_dim * W), mid_dim * W),
        "lw_b": mk(ks[11], (out_dim,), mid_dim * W),
    }


# ---------------------- pure-JAX f32 reference (verification) -------------

def reference_forward(x, params):
    def leaky(v):
        return jnp.where(v >= 0, v, NEG_SLOPE * v)

    dn = ("NCHW", "OIHW", "NCHW")
    hp = lax.Precision.HIGHEST

    ch = lax.conv_general_dilated(x, params["c1h_w"], (1, 1), "VALID",
                                  dimension_numbers=dn, precision=hp)
    ch = leaky(ch + params["c1h_b"][None, :, None, None])
    ch = lax.conv_general_dilated(ch, params["c2h_w"], (1, 1), "VALID",
                                  dimension_numbers=dn, precision=hp)
    ch = leaky(ch + params["c2h_b"][None, :, None, None])
    xh = jnp.matmul(ch.reshape(ch.shape[0], -1), params["lh_w"].T, precision=hp) + params["lh_b"]

    cw = lax.conv_general_dilated(x, params["c1w_w"], (1, 1), "VALID",
                                  dimension_numbers=dn, precision=hp)
    cw = leaky(cw + params["c1w_b"][None, :, None, None])
    cw = lax.conv_general_dilated(cw, params["c2w_w"], (1, 1), "VALID",
                                  dimension_numbers=dn, precision=hp)
    cw = leaky(cw + params["c2w_b"][None, :, None, None])
    xw = jnp.matmul(cw.reshape(cw.shape[0], -1), params["lw_w"].T, precision=hp) + params["lw_b"]

    return xw + xh


if __name__ == "__main__":
    B = 2
    C, H, W = 4, 16, 16
    mid_dim, out_dim = 8, 16

    key = jax.random.PRNGKey(0)
    kx, kp = jax.random.split(key)
    x = jax.random.normal(kx, (B, C, H, W), jnp.float32)
    params = init_params(kp, mid_dim, (C, H, W), out_dim)
    prepped = prepare_params(params, mid_dim, (C, H, W), out_dim)

    out = biconvnet_forward(x, prepped, out_dim=out_dim)
    out = jax.block_until_ready(out)

    ref = reference_forward(x, params)
    # bf16 MXU operands vs f32-HIGHEST reference -> 2e-2 tolerance.
    np.testing.assert_allclose(np.asarray(out), np.asarray(ref), rtol=2e-2, atol=2e-2)

    print("KERNEL_OK")
</pallas_src>

<mosaic_0001>
module attributes {stable_mosaic.version = 11 : i64} {
  func.func @biconv_kernel(%arg0: i32, %arg1: i32, %arg2: memref<1x1x128x64xbf16, #tpu.memory_space<vmem>>, %arg3: memref<1x1x128x64xbf16, #tpu.memory_space<vmem>>, %arg4: memref<64x16xbf16, #tpu.memory_space<vmem>>, %arg5: memref<1x16xf32, #tpu.memory_space<vmem>>, %arg6: memref<16x8xbf16, #tpu.memory_space<vmem>>, %arg7: memref<1x8xf32, #tpu.memory_space<vmem>>, %arg8: memref<16x8x128xbf16, #tpu.memory_space<vmem>>, %arg9: memref<64x16xbf16, #tpu.memory_space<vmem>>, %arg10: memref<1x16xf32, #tpu.memory_space<vmem>>, %arg11: memref<16x8xbf16, #tpu.memory_space<vmem>>, %arg12: memref<1x8xf32, #tpu.memory_space<vmem>>, %arg13: memref<16x8x128xbf16, #tpu.memory_space<vmem>>, %arg14: memref<1x128xf32, #tpu.memory_space<vmem>>, %arg15: memref<8x128xf32, #tpu.memory_space<vmem>>) attributes {dimension_semantics = [#tpu.dimension_semantics<parallel>, #tpu.dimension_semantics<arbitrary>], iteration_bounds = array<i64: 1, 1>, scalar_prefetch = 0 : i64, scratch_operands = 0 : i64, tpu.core_type = #tpu.core_type<tc>, window_params = [{transform_indices = @transform_0, window_bounds = array<i64: 1, 1, 128, 64>}, {transform_indices = @transform_1, window_bounds = array<i64: 1, 1, 128, 64>}, {pipeline_mode = #tpu.pipeline_mode<synchronous>, transform_indices = @transform_2, window_bounds = array<i64: 64, 16>}, {pipeline_mode = #tpu.pipeline_mode<synchronous>, transform_indices = @transform_3, window_bounds = array<i64: 1, 16>}, {pipeline_mode = #tpu.pipeline_mode<synchronous>, transform_indices = @transform_4, window_bounds = array<i64: 16, 8>}, {pipeline_mode = #tpu.pipeline_mode<synchronous>, transform_indices = @transform_5, window_bounds = array<i64: 1, 8>}, {pipeline_mode = #tpu.pipeline_mode<synchronous>, transform_indices = @transform_6, window_bounds = array<i64: 16, 8, 128>}, {pipeline_mode = #tpu.pipeline_mode<synchronous>, transform_indices = @transform_7, window_bounds = array<i64: 64, 16>}, {pipeline_mode = #tpu.pipeline_mode<synchronous>, transform_indices = @transform_8, window_bounds = array<i64: 1, 16>}, {pipeline_mode = #tpu.pipeline_mode<synchronous>, transform_indices = @transform_9, window_bounds = array<i64: 16, 8>}, {pipeline_mode = #tpu.pipeline_mode<synchronous>, transform_indices = @transform_10, window_bounds = array<i64: 1, 8>}, {pipeline_mode = #tpu.pipeline_mode<synchronous>, transform_indices = @transform_11, window_bounds = array<i64: 16, 8, 128>}, {pipeline_mode = #tpu.pipeline_mode<synchronous>, transform_indices = @transform_12, window_bounds = array<i64: 1, 128>}, {transform_indices = @transform_13, window_bounds = array<i64: 8, 128>}]} {
    %c0_i32 = arith.constant 0 : i32
    %0 = arith.cmpi eq, %arg1, %c0_i32 : i32
    %1 = arith.extui %0 : i1 to i32
    %c0_i32_0 = arith.constant 0 : i32
    %2 = arith.cmpi ne, %1, %c0_i32_0 : i32
    scf.if %2 {
      %c0_157 = arith.constant 0 : index
      %c0_158 = arith.constant 0 : index
      %315 = vector.load %arg14[%c0_157, %c0_158] : memref<1x128xf32, #tpu.memory_space<vmem>>, vector<1x128xf32>
      %316 = vector.shape_cast %315 : vector<1x128xf32> to vector<1x128xf32>
      %317 = vector.broadcast %316 : vector<1x128xf32> to vector<8x128xf32>
      %c0_159 = arith.constant 0 : index
      %c0_160 = arith.constant 0 : index
      %318 = vector.load %arg15[%c0_159, %c0_160] : memref<8x128xf32, #tpu.memory_space<vmem>>, vector<8x128xf32>
      tpu.vector_store %arg15[%c0_159, %c0_160], %317 {strides = array<i32>} : memref<8x128xf32, #tpu.memory_space<vmem>>, vector<8x128xf32>,
    } else {
    }
    %c0 = arith.constant 0 : index
    %c0_1 = arith.constant 0 : index
    %3 = vector.load %arg15[%c0, %c0_1] : memref<8x128xf32, #tpu.memory_space<vmem>>, vector<8x128xf32>
    %c0_2 = arith.constant 0 : index
    %c0_3 = arith.constant 0 : index
    %c0_4 = arith.constant 0 : index
    %c0_5 = arith.constant 0 : index
    %4 = vector.load %arg2[%c0_2, %c0_3, %c0_4, %c0_5] : memref<1x1x128x64xbf16, #tpu.memory_space<vmem>>, vector<1x1x128x64xbf16>
    %5 = vector.shape_cast %4 : vector<1x1x128x64xbf16> to vector<128x64xbf16>
    %c0_6 = arith.constant 0 : index
    %c0_7 = arith.constant 0 : index
    %6 = vector.load %arg4[%c0_6, %c0_7] : memref<64x16xbf16, #tpu.memory_space<vmem>>, vector<64x16xbf16>
    %cst = arith.constant dense<0.000000e+00> : vector<128x16xf32>
    %7 = tpu.matmul %5, %6, %cst {dimension_numbers = #tpu.dot_dimension_numbers<[1], [0], [0], [1], [0, 0, 1, 1], [], []>} : vector<128x64xbf16>, vector<64x16xbf16>, vector<128x16xf32> -> vector<128x16xf32>
    %c0_8 = arith.constant 0 : index
    %c0_9 = arith.constant 0 : index
    %8 = vector.load %arg5[%c0_8, %c0_9] : memref<1x16xf32, #tpu.memory_space<vmem>>, vector<1x16xf32>
    %9 = vector.broadcast %8 : vector<1x16xf32> to vector<128x16xf32>
    %10 = arith.addf %7, %9 : vector<128x16xf32>
    %cst_10 = arith.constant 0.000000e+00 : f32
    %11 = vector.broadcast %cst_10 : f32 to vector<128x16xf32>
    %12 = arith.cmpf oge, %10, %11 : vector<128x16xf32>
    %cst_11 = arith.constant 0.00999999977 : f32
    %13 = vector.broadcast %cst_11 : f32 to vector<128x16xf32>
    %14 = arith.mulf %13, %10 : vector<128x16xf32>
    %15 = arith.select %12, %10, %14 : vector<128x16xi1>, vector<128x16xf32>
    %16 = arith.truncf %15 : vector<128x16xf32> to vector<128x16xbf16>
    %c0_12 = arith.constant 0 : index
    %c0_13 = arith.constant 0 : index
    %17 = vector.load %arg6[%c0_12, %c0_13] : memref<16x8xbf16, #tpu.memory_space<vmem>>, vector<16x8xbf16>
    %cst_14 = arith.constant dense<0.000000e+00> : vector<128x8xf32>
    %18 = tpu.matmul %16, %17, %cst_14 {dimension_numbers = #tpu.dot_dimension_numbers<[1], [0], [0], [1], [0, 0, 1, 1], [], []>} : vector<128x16xbf16>, vector<16x8xbf16>, vector<128x8xf32> -> vector<128x8xf32>
    %c0_15 = arith.constant 0 : index
    %c0_16 = arith.constant 0 : index
    %19 = vector.load %arg7[%c0_15, %c0_16] : memref<1x8xf32, #tpu.memory_space<vmem>>, vector<1x8xf32>
    %20 = vector.broadcast %19 : vector<1x8xf32> to vector<128x8xf32>
    %21 = arith.addf %18, %20 : vector<128x8xf32>
    %cst_17 = arith.constant 0.000000e+00 : f32
    %22 = vector.broadcast %cst_17 : f32 to vector<128x8xf32>
    %23 = arith.cmpf oge, %21, %22 : vector<128x8xf32>
    %cst_18 = arith.constant 0.00999999977 : f32
    %24 = vector.broadcast %cst_18 : f32 to vector<128x8xf32>
    %25 = arith.mulf %24, %21 : vector<128x8xf32>
    %26 = arith.select %23, %21, %25 : vector<128x8xi1>, vector<128x8xf32>
    %c0_i32_19 = arith.constant 0 : i32
    %27 = arith.minsi %arg1, %c0_i32_19 : i32
    %c16_i32 = arith.constant 16 : i32
    %28 = arith.muli %27, %c16_i32 : i32
    %cst_20 = arith.constant 0.000000e+00 : f32
    %29 = vector.broadcast %cst_20 : f32 to vector<8x128xf32>
    %30 = vector.extract_strided_slice %26 {offsets = [0, 0], sizes = [8, 8], strides = [1, 1]} : vector<128x8xf32> to vector<8x8xf32>
    %31 = arith.truncf %30 : vector<8x8xf32> to vector<8x8xbf16>
    %c0_i32_21 = arith.constant 0 : i32
    %32 = arith.addi %28, %c0_i32_21 : i32
    %33 = arith.index_cast %32 : i32 to index
    %c0_22 = arith.constant 0 : index
    %c0_23 = arith.constant 0 : index
    %34 = vector.load %arg8[%33, %c0_22, %c0_23] : memref<16x8x128xbf16, #tpu.memory_space<vmem>>, vector<1x8x128xbf16>
    %35 = vector.shape_cast %34 : vector<1x8x128xbf16> to vector<8x128xbf16>
    %cst_24 = arith.constant dense<0.000000e+00> : vector<8x128xf32>
    %36 = tpu.matmul %31, %35, %cst_24 {dimension_numbers = #tpu.dot_dimension_numbers<[1], [0], [0], [1], [0, 0, 1, 1], [], []>} : vector<8x8xbf16>, vector<8x128xbf16>, vector<8x128xf32> -> vector<8x128xf32>
    %37 = arith.addf %29, %36 : vector<8x128xf32>
    %38 = vector.extract_strided_slice %26 {offsets = [8, 0], sizes = [8, 8], strides = [1, 1]} : vector<128x8xf32> to vector<8x8xf32>
    %39 = arith.truncf %38 : vector<8x8xf32> to vector<8x8xbf16>
    %c1_i32 = arith.constant 1 : i32
    %40 = arith.addi %28, %c1_i32 : i32
    %41 = arith.index_cast %40 : i32 to index
    %c0_25 = arith.constant 0 : index
    %c0_26 = arith.constant 0 : index
    %42 = vector.load %arg8[%41, %c0_25, %c0_26] : memref<16x8x128xbf16, #tpu.memory_space<vmem>>, vector<1x8x128xbf16>
    %43 = vector.shape_cast %42 : vector<1x8x128xbf16> to vector<8x128xbf16>
    %cst_27 = arith.constant dense<0.000000e+00> : vector<8x128xf32>
    %44 = tpu.matmul %39, %43, %cst_27 {dimension_numbers = #tpu.dot_dimension_numbers<[1], [0], [0], [1], [0, 0, 1, 1], [], []>} : vector<8x8xbf16>, vector<8x128xbf16>, vector<8x128xf32> -> vector<8x128xf32>
    %45 = arith.addf %37, %44 : vector<8x128xf32>
    %46 = vector.extract_strided_slice %26 {offsets = [16, 0], sizes = [8, 8], strides = [1, 1]} : vector<128x8xf32> to vector<8x8xf32>
    %47 = arith.truncf %46 : vector<8x8xf32> to vector<8x8xbf16>
    %c2_i32 = arith.constant 2 : i32
    %48 = arith.addi %28, %c2_i32 : i32
    %49 = arith.index_cast %48 : i32 to index
    %c0_28 = arith.constant 0 : index
    %c0_29 = arith.constant 0 : index
    %50 = vector.load %arg8[%49, %c0_28, %c0_29] : memref<16x8x128xbf16, #tpu.memory_space<vmem>>, vector<1x8x128xbf16>
    %51 = vector.shape_cast %50 : vector<1x8x128xbf16> to vector<8x128xbf16>
    %cst_30 = arith.constant dense<0.000000e+00> : vector<8x128xf32>
    %52 = tpu.matmul %47, %51, %cst_30 {dimension_numbers = #tpu.dot_dimension_numbers<[1], [0], [0], [1], [0, 0, 1, 1], [], []>} : vector<8x8xbf16>, vector<8x128xbf16>, vector<8x128xf32> -> vector<8x128xf32>
    %53 = arith.addf %45, %52 : vector<8x128xf32>
    %54 = vector.extract_strided_slice %26 {offsets = [24, 0], sizes = [8, 8], strides = [1, 1]} : vector<128x8xf32> to vector<8x8xf32>
    %55 = arith.truncf %54 : vector<8x8xf32> to vector<8x8xbf16>
    %c3_i32 = arith.constant 3 : i32
    %56 = arith.addi %28, %c3_i32 : i32
    %57 = arith.index_cast %56 : i32 to index
    %c0_31 = arith.constant 0 : index
    %c0_32 = arith.constant 0 : index
    %58 = vector.load %arg8[%57, %c0_31, %c0_32] : memref<16x8x128xbf16, #tpu.memory_space<vmem>>, vector<1x8x128xbf16>
    %59 = vector.shape_cast %58 : vector<1x8x128xbf16> to vector<8x128xbf16>
    %cst_33 = arith.constant dense<0.000000e+00> : vector<8x128xf32>
    %60 = tpu.matmul %55, %59, %cst_33 {dimension_numbers = #tpu.dot_dimension_numbers<[1], [0], [0], [1], [0, 0, 1, 1], [], []>} : vector<8x8xbf16>, vector<8x128xbf16>, vector<8x128xf32> -> vector<8x128xf32>
    %61 = arith.addf %53, %60 : vector<8x128xf32>
    %62 = vector.extract_strided_slice %26 {offsets = [32, 0], sizes = [8, 8], strides = [1, 1]} : vector<128x8xf32> to vector<8x8xf32>
    %63 = arith.truncf %62 : vector<8x8xf32> to vector<8x8xbf16>
    %c4_i32 = arith.constant 4 : i32
    %64 = arith.addi %28, %c4_i32 : i32
    %65 = arith.index_cast %64 : i32 to index
    %c0_34 = arith.constant 0 : index
    %c0_35 = arith.constant 0 : index
    %66 = vector.load %arg8[%65, %c0_34, %c0_35] : memref<16x8x128xbf16, #tpu.memory_space<vmem>>, vector<1x8x128xbf16>
    %67 = vector.shape_cast %66 : vector<1x8x128xbf16> to vector<8x128xbf16>
    %cst_36 = arith.constant dense<0.000000e+00> : vector<8x128xf32>
    %68 = tpu.matmul %63, %67, %cst_36 {dimension_numbers = #tpu.dot_dimension_numbers<[1], [0], [0], [1], [0, 0, 1, 1], [], []>} : vector<8x8xbf16>, vector<8x128xbf16>, vector<8x128xf32> -> vector<8x128xf32>
    %69 = arith.addf %61, %68 : vector<8x128xf32>
    %70 = vector.extract_strided_slice %26 {offsets = [40, 0], sizes = [8, 8], strides = [1, 1]} : vector<128x8xf32> to vector<8x8xf32>
    %71 = arith.truncf %70 : vector<8x8xf32> to vector<8x8xbf16>
    %c5_i32 = arith.constant 5 : i32
    %72 = arith.addi %28, %c5_i32 : i32
    %73 = arith.index_cast %72 : i32 to index
    %c0_37 = arith.constant 0 : index
    %c0_38 = arith.constant 0 : index
    %74 = vector.load %arg8[%73, %c0_37, %c0_38] : memref<16x8x128xbf16, #tpu.memory_space<vmem>>, vector<1x8x128xbf16>
    %75 = vector.shape_cast %74 : vector<1x8x128xbf16> to vector<8x128xbf16>
    %cst_39 = arith.constant dense<0.000000e+00> : vector<8x128xf32>
    %76 = tpu.matmul %71, %75, %cst_39 {dimension_numbers = #tpu.dot_dimension_numbers<[1], [0], [0], [1], [0, 0, 1, 1], [], []>} : vector<8x8xbf16>, vector<8x128xbf16>, vector<8x128xf32> -> vector<8x128xf32>
    %77 = arith.addf %69, %76 : vector<8x128xf32>
    %78 = vector.extract_strided_slice %26 {offsets = [48, 0], sizes = [8, 8], strides = [1, 1]} : vector<128x8xf32> to vector<8x8xf32>
    %79 = arith.truncf %78 : vector<8x8xf32> to vector<8x8xbf16>
    %c6_i32 = arith.constant 6 : i32
    %80 = arith.addi %28, %c6_i32 : i32
    %81 = arith.index_cast %80 : i32 to index
    %c0_40 = arith.constant 0 : index
    %c0_41 = arith.constant 0 : index
    %82 = vector.load %arg8[%81, %c0_40, %c0_41] : memref<16x8x128xbf16, #tpu.memory_space<vmem>>, vector<1x8x128xbf16>
    %83 = vector.shape_cast %82 : vector<1x8x128xbf16> to vector<8x128xbf16>
    %cst_42 = arith.constant dense<0.000000e+00> : vector<8x128xf32>
    %84 = tpu.matmul %79, %83, %cst_42 {dimension_numbers = #tpu.dot_dimension_numbers<[1], [0], [0], [1], [0, 0, 1, 1], [], []>} : vector<8x8xbf16>, vector<8x128xbf16>, vector<8x128xf32> -> vector<8x128xf32>
    %85 = arith.addf %77, %84 : vector<8x128xf32>
    %86 = vector.extract_strided_slice %26 {offsets = [56, 0], sizes = [8, 8], strides = [1, 1]} : vector<128x8xf32> to vector<8x8xf32>
    %87 = arith.truncf %86 : vector<8x8xf32> to vector<8x8xbf16>
    %c7_i32 = arith.constant 7 : i32
    %88 = arith.addi %28, %c7_i32 : i32
    %89 = arith.index_cast %88 : i32 to index
    %c0_43 = arith.constant 0 : index
    %c0_44 = arith.constant 0 : index
    %90 = vector.load %arg8[%89, %c0_43, %c0_44] : memref<16x8x128xbf16, #tpu.memory_space<vmem>>, vector<1x8x128xbf16>
    %91 = vector.shape_cast %90 : vector<1x8x128xbf16> to vector<8x128xbf16>
    %cst_45 = arith.constant dense<0.000000e+00> : vector<8x128xf32>
    %92 = tpu.matmul %87, %91, %cst_45 {dimension_numbers = #tpu.dot_dimension_numbers<[1], [0], [0], [1], [0, 0, 1, 1], [], []>} : vector<8x8xbf16>, vector<8x128xbf16>, vector<8x128xf32> -> vector<8x128xf32>
    %93 = arith.addf %85, %92 : vector<8x128xf32>
    %94 = vector.extract_strided_slice %26 {offsets = [64, 0], sizes = [8, 8], strides = [1, 1]} : vector<128x8xf32> to vector<8x8xf32>
    %95 = arith.truncf %94 : vector<8x8xf32> to vector<8x8xbf16>
    %c8_i32 = arith.constant 8 : i32
    %96 = arith.addi %28, %c8_i32 : i32
    %97 = arith.index_cast %96 : i32 to index
    %c0_46 = arith.constant 0 : index
    %c0_47 = arith.constant 0 : index
    %98 = vector.load %arg8[%97, %c0_46, %c0_47] : memref<16x8x128xbf16, #tpu.memory_space<vmem>>, vector<1x8x128xbf16>
    %99 = vector.shape_cast %98 : vector<1x8x128xbf16> to vector<8x128xbf16>
    %cst_48 = arith.constant dense<0.000000e+00> : vector<8x128xf32>
    %100 = tpu.matmul %95, %99, %cst_48 {dimension_numbers = #tpu.dot_dimension_numbers<[1], [0], [0], [1], [0, 0, 1, 1], [], []>} : vector<8x8xbf16>, vector<8x128xbf16>, vector<8x128xf32> -> vector<8x128xf32>
    %101 = arith.addf %93, %100 : vector<8x128xf32>
    %102 = vector.extract_strided_slice %26 {offsets = [72, 0], sizes = [8, 8], strides = [1, 1]} : vector<128x8xf32> to vector<8x8xf32>
    %103 = arith.truncf %102 : vector<8x8xf32> to vector<8x8xbf16>
    %c9_i32 = arith.constant 9 : i32
    %104 = arith.addi %28, %c9_i32 : i32
    %105 = arith.index_cast %104 : i32 to index
    %c0_49 = arith.constant 0 : index
    %c0_50 = arith.constant 0 : index
    %106 = vector.load %arg8[%105, %c0_49, %c0_50] : memref<16x8x128xbf16, #tpu.memory_space<vmem>>, vector<1x8x128xbf16>
    %107 = vector.shape_cast %106 : vector<1x8x128xbf16> to vector<8x128xbf16>
    %cst_51 = arith.constant dense<0.000000e+00> : vector<8x128xf32>
    %108 = tpu.matmul %103, %107, %cst_51 {dimension_numbers = #tpu.dot_dimension_numbers<[1], [0], [0], [1], [0, 0, 1, 1], [], []>} : vector<8x8xbf16>, vector<8x128xbf16>, vector<8x128xf32> -> vector<8x128xf32>
    %109 = arith.addf %101, %108 : vector<8x128xf32>
    %110 = vector.extract_strided_slice %26 {offsets = [80, 0], sizes = [8, 8], strides = [1, 1]} : vector<128x8xf32> to vector<8x8xf32>
    %111 = arith.truncf %110 : vector<8x8xf32> to vector<8x8xbf16>
    %c10_i32 = arith.constant 10 : i32
    %112 = arith.addi %28, %c10_i32 : i32
    %113 = arith.index_cast %112 : i32 to index
    %c0_52 = arith.constant 0 : index
    %c0_53 = arith.constant 0 : index
    %114 = vector.load %arg8[%113, %c0_52, %c0_53] : memref<16x8x128xbf16, #tpu.memory_space<vmem>>, vector<1x8x128xbf16>
    %115 = vector.shape_cast %114 : vector<1x8x128xbf16> to vector<8x128xbf16>
    %cst_54 = arith.constant dense<0.000000e+00> : vector<8x128xf32>
    %116 = tpu.matmul %111, %115, %cst_54 {dimension_numbers = #tpu.dot_dimension_numbers<[1], [0], [0], [1], [0, 0, 1, 1], [], []>} : vector<8x8xbf16>, vector<8x128xbf16>, vector<8x128xf32> -> vector<8x128xf32>
    %117 = arith.addf %109, %116 : vector<8x128xf32>
    %118 = vector.extract_strided_slice %26 {offsets = [88, 0], sizes = [8, 8], strides = [1, 1]} : vector<128x8xf32> to vector<8x8xf32>
    %119 = arith.truncf %118 : vector<8x8xf32> to vector<8x8xbf16>
    %c11_i32 = arith.constant 11 : i32
    %120 = arith.addi %28, %c11_i32 : i32
    %121 = arith.index_cast %120 : i32 to index
    %c0_55 = arith.constant 0 : index
    %c0_56 = arith.constant 0 : index
    %122 = vector.load %arg8[%121, %c0_55, %c0_56] : memref<16x8x128xbf16, #tpu.memory_space<vmem>>, vector<1x8x128xbf16>
    %123 = vector.shape_cast %122 : vector<1x8x128xbf16> to vector<8x128xbf16>
    %cst_57 = arith.constant dense<0.000000e+00> : vector<8x128xf32>
    %124 = tpu.matmul %119, %123, %cst_57 {dimension_numbers = #tpu.dot_dimension_numbers<[1], [0], [0], [1], [0, 0, 1, 1], [], []>} : vector<8x8xbf16>, vector<8x128xbf16>, vector<8x128xf32> -> vector<8x128xf32>
    %125 = arith.addf %117, %124 : vector<8x128xf32>
    %126 = vector.extract_strided_slice %26 {offsets = [96, 0], sizes = [8, 8], strides = [1, 1]} : vector<128x8xf32> to vector<8x8xf32>
    %127 = arith.truncf %126 : vector<8x8xf32> to vector<8x8xbf16>
    %c12_i32 = arith.constant 12 : i32
    %128 = arith.addi %28, %c12_i32 : i32
    %129 = arith.index_cast %128 : i32 to index
    %c0_58 = arith.constant 0 : index
    %c0_59 = arith.constant 0 : index
    %130 = vector.load %arg8[%129, %c0_58, %c0_59] : memref<16x8x128xbf16, #tpu.memory_space<vmem>>, vector<1x8x128xbf16>
    %131 = vector.shape_cast %130 : vector<1x8x128xbf16> to vector<8x128xbf16>
    %cst_60 = arith.constant dense<0.000000e+00> : vector<8x128xf32>
    %132 = tpu.matmul %127, %131, %cst_60 {dimension_numbers = #tpu.dot_dimension_numbers<[1], [0], [0], [1], [0, 0, 1, 1], [], []>} : vector<8x8xbf16>, vector<8x128xbf16>, vector<8x128xf32> -> vector<8x128xf32>
    %133 = arith.addf %125, %132 : vector<8x128xf32>
    %134 = vector.extract_strided_slice %26 {offsets = [104, 0], sizes = [8, 8], strides = [1, 1]} : vector<128x8xf32> to vector<8x8xf32>
    %135 = arith.truncf %134 : vector<8x8xf32> to vector<8x8xbf16>
    %c13_i32 = arith.constant 13 : i32
    %136 = arith.addi %28, %c13_i32 : i32
    %137 = arith.index_cast %136 : i32 to index
    %c0_61 = arith.constant 0 : index
    %c0_62 = arith.constant 0 : index
    %138 = vector.load %arg8[%137, %c0_61, %c0_62] : memref<16x8x128xbf16, #tpu.memory_space<vmem>>, vector<1x8x128xbf16>
    %139 = vector.shape_cast %138 : vector<1x8x128xbf16> to vector<8x128xbf16>
    %cst_63 = arith.constant dense<0.000000e+00> : vector<8x128xf32>
    %140 = tpu.matmul %135, %139, %cst_63 {dimension_numbers = #tpu.dot_dimension_numbers<[1], [0], [0], [1], [0, 0, 1, 1], [], []>} : vector<8x8xbf16>, vector<8x128xbf16>, vector<8x128xf32> -> vector<8x128xf32>
    %141 = arith.addf %133, %140 : vector<8x128xf32>
    %142 = vector.extract_strided_slice %26 {offsets = [112, 0], sizes = [8, 8], strides = [1, 1]} : vector<128x8xf32> to vector<8x8xf32>
    %143 = arith.truncf %142 : vector<8x8xf32> to vector<8x8xbf16>
    %c14_i32 = arith.constant 14 : i32
    %144 = arith.addi %28, %c14_i32 : i32
    %145 = arith.index_cast %144 : i32 to index
    %c0_64 = arith.constant 0 : index
    %c0_65 = arith.constant 0 : index
    %146 = vector.load %arg8[%145, %c0_64, %c0_65] : memref<16x8x128xbf16, #tpu.memory_space<vmem>>, vector<1x8x128xbf16>
    %147 = vector.shape_cast %146 : vector<1x8x128xbf16> to vector<8x128xbf16>
    %cst_66 = arith.constant dense<0.000000e+00> : vector<8x128xf32>
    %148 = tpu.matmul %143, %147, %cst_66 {dimension_numbers = #tpu.dot_dimension_numbers<[1], [0], [0], [1], [0, 0, 1, 1], [], []>} : vector<8x8xbf16>, vector<8x128xbf16>, vector<8x128xf32> -> vector<8x128xf32>
    %149 = arith.addf %141, %148 : vector<8x128xf32>
    %150 = vector.extract_strided_slice %26 {offsets = [120, 0], sizes = [8, 8], strides = [1, 1]} : vector<128x8xf32> to vector<8x8xf32>
    %151 = arith.truncf %150 : vector<8x8xf32> to vector<8x8xbf16>
    %c15_i32 = arith.constant 15 : i32
    %152 = arith.addi %28, %c15_i32 : i32
    %153 = arith.index_cast %152 : i32 to index
    %c0_67 = arith.constant 0 : index
    %c0_68 = arith.constant 0 : index
    %154 = vector.load %arg8[%153, %c0_67, %c0_68] : memref<16x8x128xbf16, #tpu.memory_space<vmem>>, vector<1x8x128xbf16>
    %155 = vector.shape_cast %154 : vector<1x8x128xbf16> to vector<8x128xbf16>
    %cst_69 = arith.constant dense<0.000000e+00> : vector<8x128xf32>
    %156 = tpu.matmul %151, %155, %cst_69 {dimension_numbers = #tpu.dot_dimension_numbers<[1], [0], [0], [1], [0, 0, 1, 1], [], []>} : vector<8x8xbf16>, vector<8x128xbf16>, vector<8x128xf32> -> vector<8x128xf32>
    %157 = arith.addf %149, %156 : vector<8x128xf32>
    %c0_70 = arith.constant 0 : index
    %c0_71 = arith.constant 0 : index
    %c0_72 = arith.constant 0 : index
    %c0_73 = arith.constant 0 : index
    %158 = vector.load %arg3[%c0_70, %c0_71, %c0_72, %c0_73] : memref<1x1x128x64xbf16, #tpu.memory_space<vmem>>, vector<1x1x128x64xbf16>
    %159 = vector.shape_cast %158 : vector<1x1x128x64xbf16> to vector<128x64xbf16>
    %c0_74 = arith.constant 0 : index
    %c0_75 = arith.constant 0 : index
    %160 = vector.load %arg9[%c0_74, %c0_75] : memref<64x16xbf16, #tpu.memory_space<vmem>>, vector<64x16xbf16>
    %cst_76 = arith.constant dense<0.000000e+00> : vector<128x16xf32>
    %161 = tpu.matmul %159, %160, %cst_76 {dimension_numbers = #tpu.dot_dimension_numbers<[1], [0], [0], [1], [0, 0, 1, 1], [], []>} : vector<128x64xbf16>, vector<64x16xbf16>, vector<128x16xf32> -> vector<128x16xf32>
    %c0_77 = arith.constant 0 : index
    %c0_78 = arith.constant 0 : index
    %162 = vector.load %arg10[%c0_77, %c0_78] : memref<1x16xf32, #tpu.memory_space<vmem>>, vector<1x16xf32>
    %163 = vector.broadcast %162 : vector<1x16xf32> to vector<128x16xf32>
    %164 = arith.addf %161, %163 : vector<128x16xf32>
    %cst_79 = arith.constant 0.000000e+00 : f32
    %165 = vector.broadcast %cst_79 : f32 to vector<128x16xf32>
    %166 = arith.cmpf oge, %164, %165 : vector<128x16xf32>
    %cst_80 = arith.constant 0.00999999977 : f32
    %167 = vector.broadcast %cst_80 : f32 to vector<128x16xf32>
    %168 = arith.mulf %167, %164 : vector<128x16xf32>
    %169 = arith.select %166, %164, %168 : vector<128x16xi1>, vector<128x16xf32>
    %170 = arith.truncf %169 : vector<128x16xf32> to vector<128x16xbf16>
    %c0_81 = arith.constant 0 : index
    %c0_82 = arith.constant 0 : index
    %171 = vector.load %arg11[%c0_81, %c0_82] : memref<16x8xbf16, #tpu.memory_space<vmem>>, vector<16x8xbf16>
    %cst_83 = arith.constant dense<0.000000e+00> : vector<128x8xf32>
    %172 = tpu.matmul %170, %171, %cst_83 {dimension_numbers = #tpu.dot_dimension_numbers<[1], [0], [0], [1], [0, 0, 1, 1], [], []>} : vector<128x16xbf16>, vector<16x8xbf16>, vector<128x8xf32> -> vector<128x8xf32>
    %c0_84 = arith.constant 0 : index
    %c0_85 = arith.constant 0 : index
    %173 = vector.load %arg12[%c0_84, %c0_85] : memref<1x8xf32, #tpu.memory_space<vmem>>, vector<1x8xf32>
    %174 = vector.broadcast %173 : vector<1x8xf32> to vector<128x8xf32>
    %175 = arith.addf %172, %174 : vector<128x8xf32>
    %cst_86 = arith.constant 0.000000e+00 : f32
    %176 = vector.broadcast %cst_86 : f32 to vector<128x8xf32>
    %177 = arith.cmpf oge, %175, %176 : vector<128x8xf32>
    %cst_87 = arith.constant 0.00999999977 : f32
    %178 = vector.broadcast %cst_87 : f32 to vector<128x8xf32>
    %179 = arith.mulf %178, %175 : vector<128x8xf32>
    %180 = arith.select %177, %175, %179 : vector<128x8xi1>, vector<128x8xf32>
    %c0_i32_88 = arith.constant 0 : i32
    %181 = arith.minsi %arg1, %c0_i32_88 : i32
    %c16_i32_89 = arith.constant 16 : i32
    %182 = arith.muli %181, %c16_i32_89 : i32
    %cst_90 = arith.constant 0.000000e+00 : f32
    %183 = vector.broadcast %cst_90 : f32 to vector<8x128xf32>
    %184 = vector.extract_strided_slice %180 {offsets = [0, 0], sizes = [8, 8], strides = [1, 1]} : vector<128x8xf32> to vector<8x8xf32>
    %185 = arith.truncf %184 : vector<8x8xf32> to vector<8x8xbf16>
    %c0_i32_91 = arith.constant 0 : i32
    %186 = arith.addi %182, %c0_i32_91 : i32
    %187 = arith.index_cast %186 : i32 to index
    %c0_92 = arith.constant 0 : index
    %c0_93 = arith.constant 0 : index
    %188 = vector.load %arg13[%187, %c0_92, %c0_93] : memref<16x8x128xbf16, #tpu.memory_space<vmem>>, vector<1x8x128xbf16>
    %189 = vector.shape_cast %188 : vector<1x8x128xbf16> to vector<8x128xbf16>
    %cst_94 = arith.constant dense<0.000000e+00> : vector<8x128xf32>
    %190 = tpu.matmul %185, %189, %cst_94 {dimension_numbers = #tpu.dot_dimension_numbers<[1], [0], [0], [1], [0, 0, 1, 1], [], []>} : vector<8x8xbf16>, vector<8x128xbf16>, vector<8x128xf32> -> vector<8x128xf32>
    %191 = arith.addf %183, %190 : vector<8x128xf32>
    %192 = vector.extract_strided_slice %180 {offsets = [8, 0], sizes = [8, 8], strides = [1, 1]} : vector<128x8xf32> to vector<8x8xf32>
    %193 = arith.truncf %192 : vector<8x8xf32> to vector<8x8xbf16>
    %c1_i32_95 = arith.constant 1 : i32
    %194 = arith.addi %182, %c1_i32_95 : i32
    %195 = arith.index_cast %194 : i32 to index
    %c0_96 = arith.constant 0 : index
    %c0_97 = arith.constant 0 : index
    %196 = vector.load %arg13[%195, %c0_96, %c0_97] : memref<16x8x128xbf16, #tpu.memory_space<vmem>>, vector<1x8x128xbf16>
    %197 = vector.shape_cast %196 : vector<1x8x128xbf16> to vector<8x128xbf16>
    %cst_98 = arith.constant dense<0.000000e+00> : vector<8x128xf32>
    %198 = tpu.matmul %193, %197, %cst_98 {dimension_numbers = #tpu.dot_dimension_numbers<[1], [0], [0], [1], [0, 0, 1, 1], [], []>} : vector<8x8xbf16>, vector<8x128xbf16>, vector<8x128xf32> -> vector<8x128xf32>
    %199 = arith.addf %191, %198 : vector<8x128xf32>
    %200 = vector.extract_strided_slice %180 {offsets = [16, 0], sizes = [8, 8], strides = [1, 1]} : vector<128x8xf32> to vector<8x8xf32>
    %201 = arith.truncf %200 : vector<8x8xf32> to vector<8x8xbf16>
    %c2_i32_99 = arith.constant 2 : i32
    %202 = arith.addi %182, %c2_i32_99 : i32
    %203 = arith.index_cast %202 : i32 to index
    %c0_100 = arith.constant 0 : index
    %c0_101 = arith.constant 0 : index
    %204 = vector.load %arg13[%203, %c0_100, %c0_101] : memref<16x8x128xbf16, #tpu.memory_space<vmem>>, vector<1x8x128xbf16>
    %205 = vector.shape_cast %204 : vector<1x8x128xbf16> to vector<8x128xbf16>
    %cst_102 = arith.constant dense<0.000000e+00> : vector<8x128xf32>
    %206 = tpu.matmul %201, %205, %cst_102 {dimension_numbers = #tpu.dot_dimension_numbers<[1], [0], [0], [1], [0, 0, 1, 1], [], []>} : vector<8x8xbf16>, vector<8x128xbf16>, vector<8x128xf32> -> vector<8x128xf32>
    %207 = arith.addf %199, %206 : vector<8x128xf32>
    %208 = vector.extract_strided_slice %180 {offsets = [24, 0], sizes = [8, 8], strides = [1, 1]} : vector<128x8xf32> to vector<8x8xf32>
    %209 = arith.truncf %208 : vector<8x8xf32> to vector<8x8xbf16>
    %c3_i32_103 = arith.constant 3 : i32
    %210 = arith.addi %182, %c3_i32_103 : i32
    %211 = arith.index_cast %210 : i32 to index
    %c0_104 = arith.constant 0 : index
    %c0_105 = arith.constant 0 : index
    %212 = vector.load %arg13[%211, %c0_104, %c0_105] : memref<16x8x128xbf16, #tpu.memory_space<vmem>>, vector<1x8x128xbf16>
    %213 = vector.shape_cast %212 : vector<1x8x128xbf16> to vector<8x128xbf16>
    %cst_106 = arith.constant dense<0.000000e+00> : vector<8x128xf32>
    %214 = tpu.matmul %209, %213, %cst_106 {dimension_numbers = #tpu.dot_dimension_numbers<[1], [0], [0], [1], [0, 0, 1, 1], [], []>} : vector<8x8xbf16>, vector<8x128xbf16>, vector<8x128xf32> -> vector<8x128xf32>
    %215 = arith.addf %207, %214 : vector<8x128xf32>
    %216 = vector.extract_strided_slice %180 {offsets = [32, 0], sizes = [8, 8], strides = [1, 1]} : vector<128x8xf32> to vector<8x8xf32>
    %217 = arith.truncf %216 : vector<8x8xf32> to vector<8x8xbf16>
    %c4_i32_107 = arith.constant 4 : i32
    %218 = arith.addi %182, %c4_i32_107 : i32
    %219 = arith.index_cast %218 : i32 to index
    %c0_108 = arith.constant 0 : index
    %c0_109 = arith.constant 0 : index
    %220 = vector.load %arg13[%219, %c0_108, %c0_109] : memref<16x8x128xbf16, #tpu.memory_space<vmem>>, vector<1x8x128xbf16>
    %221 = vector.shape_cast %220 : vector<1x8x128xbf16> to vector<8x128xbf16>
    %cst_110 = arith.constant dense<0.000000e+00> : vector<8x128xf32>
    %222 = tpu.matmul %217, %221, %cst_110 {dimension_numbers = #tpu.dot_dimension_numbers<[1], [0], [0], [1], [0, 0, 1, 1], [], []>} : vector<8x8xbf16>, vector<8x128xbf16>, vector<8x128xf32> -> vector<8x128xf32>
    %223 = arith.addf %215, %222 : vector<8x128xf32>
    %224 = vector.extract_strided_slice %180 {offsets = [40, 0], sizes = [8, 8], strides = [1, 1]} : vector<128x8xf32> to vector<8x8xf32>
    %225 = arith.truncf %224 : vector<8x8xf32> to vector<8x8xbf16>
    %c5_i32_111 = arith.constant 5 : i32
    %226 = arith.addi %182, %c5_i32_111 : i32
    %227 = arith.index_cast %226 : i32 to index
    %c0_112 = arith.constant 0 : index
    %c0_113 = arith.constant 0 : index
    %228 = vector.load %arg13[%227, %c0_112, %c0_113] : memref<16x8x128xbf16, #tpu.memory_space<vmem>>, vector<1x8x128xbf16>
    %229 = vector.shape_cast %228 : vector<1x8x128xbf16> to vector<8x128xbf16>
    %cst_114 = arith.constant dense<0.000000e+00> : vector<8x128xf32>
    %230 = tpu.matmul %225, %229, %cst_114 {dimension_numbers = #tpu.dot_dimension_numbers<[1], [0], [0], [1], [0, 0, 1, 1], [], []>} : vector<8x8xbf16>, vector<8x128xbf16>, vector<8x128xf32> -> vector<8x128xf32>
    %231 = arith.addf %223, %230 : vector<8x128xf32>
    %232 = vector.extract_strided_slice %180 {offsets = [48, 0], sizes = [8, 8], strides = [1, 1]} : vector<128x8xf32> to vector<8x8xf32>
    %233 = arith.truncf %232 : vector<8x8xf32> to vector<8x8xbf16>
    %c6_i32_115 = arith.constant 6 : i32
    %234 = arith.addi %182, %c6_i32_115 : i32
    %235 = arith.index_cast %234 : i32 to index
    %c0_116 = arith.constant 0 : index
    %c0_117 = arith.constant 0 : index
    %236 = vector.load %arg13[%235, %c0_116, %c0_117] : memref<16x8x128xbf16, #tpu.memory_space<vmem>>, vector<1x8x128xbf16>
    %237 = vector.shape_cast %236 : vector<1x8x128xbf16> to vector<8x128xbf16>
    %cst_118 = arith.constant dense<0.000000e+00> : vector<8x128xf32>
    %238 = tpu.matmul %233, %237, %cst_118 {dimension_numbers = #tpu.dot_dimension_numbers<[1], [0], [0], [1], [0, 0, 1, 1], [], []>} : vector<8x8xbf16>, vector<8x128xbf16>, vector<8x128xf32> -> vector<8x128xf32>
    %239 = arith.addf %231, %238 : vector<8x128xf32>
    %240 = vector.extract_strided_slice %180 {offsets = [56, 0], sizes = [8, 8], strides = [1, 1]} : vector<128x8xf32> to vector<8x8xf32>
    %241 = arith.truncf %240 : vector<8x8xf32> to vector<8x8xbf16>
    %c7_i32_119 = arith.constant 7 : i32
    %242 = arith.addi %182, %c7_i32_119 : i32
    %243 = arith.index_cast %242 : i32 to index
    %c0_120 = arith.constant 0 : index
    %c0_121 = arith.constant 0 : index
    %244 = vector.load %arg13[%243, %c0_120, %c0_121] : memref<16x8x128xbf16, #tpu.memory_space<vmem>>, vector<1x8x128xbf16>
    %245 = vector.shape_cast %244 : vector<1x8x128xbf16> to vector<8x128xbf16>
    %cst_122 = arith.constant dense<0.000000e+00> : vector<8x128xf32>
    %246 = tpu.matmul %241, %245, %cst_122 {dimension_numbers = #tpu.dot_dimension_numbers<[1], [0], [0], [1], [0, 0, 1, 1], [], []>} : vector<8x8xbf16>, vector<8x128xbf16>, vector<8x128xf32> -> vector<8x128xf32>
    %247 = arith.addf %239, %246 : vector<8x128xf32>
    %248 = vector.extract_strided_slice %180 {offsets = [64, 0], sizes = [8, 8], strides = [1, 1]} : vector<128x8xf32> to vector<8x8xf32>
    %249 = arith.truncf %248 : vector<8x8xf32> to vector<8x8xbf16>
    %c8_i32_123 = arith.constant 8 : i32
    %250 = arith.addi %182, %c8_i32_123 : i32
    %251 = arith.index_cast %250 : i32 to index
    %c0_124 = arith.constant 0 : index
    %c0_125 = arith.constant 0 : index
    %252 = vector.load %arg13[%251, %c0_124, %c0_125] : memref<16x8x128xbf16, #tpu.memory_space<vmem>>, vector<1x8x128xbf16>
    %253 = vector.shape_cast %252 : vector<1x8x128xbf16> to vector<8x128xbf16>
    %cst_126 = arith.constant dense<0.000000e+00> : vector<8x128xf32>
    %254 = tpu.matmul %249, %253, %cst_126 {dimension_numbers = #tpu.dot_dimension_numbers<[1], [0], [0], [1], [0, 0, 1, 1], [], []>} : vector<8x8xbf16>, vector<8x128xbf16>, vector<8x128xf32> -> vector<8x128xf32>
    %255 = arith.addf %247, %254 : vector<8x128xf32>
    %256 = vector.extract_strided_slice %180 {offsets = [72, 0], sizes = [8, 8], strides = [1, 1]} : vector<128x8xf32> to vector<8x8xf32>
    %257 = arith.truncf %256 : vector<8x8xf32> to vector<8x8xbf16>
    %c9_i32_127 = arith.constant 9 : i32
    %258 = arith.addi %182, %c9_i32_127 : i32
    %259 = arith.index_cast %258 : i32 to index
    %c0_128 = arith.constant 0 : index
    %c0_129 = arith.constant 0 : index
    %260 = vector.load %arg13[%259, %c0_128, %c0_129] : memref<16x8x128xbf16, #tpu.memory_space<vmem>>, vector<1x8x128xbf16>
    %261 = vector.shape_cast %260 : vector<1x8x128xbf16> to vector<8x128xbf16>
    %cst_130 = arith.constant dense<0.000000e+00> : vector<8x128xf32>
    %262 = tpu.matmul %257, %261, %cst_130 {dimension_numbers = #tpu.dot_dimension_numbers<[1], [0], [0], [1], [0, 0, 1, 1], [], []>} : vector<8x8xbf16>, vector<8x128xbf16>, vector<8x128xf32> -> vector<8x128xf32>
    %263 = arith.addf %255, %262 : vector<8x128xf32>
    %264 = vector.extract_strided_slice %180 {offsets = [80, 0], sizes = [8, 8], strides = [1, 1]} : vector<128x8xf32> to vector<8x8xf32>
    %265 = arith.truncf %264 : vector<8x8xf32> to vector<8x8xbf16>
    %c10_i32_131 = arith.constant 10 : i32
    %266 = arith.addi %182, %c10_i32_131 : i32
    %267 = arith.index_cast %266 : i32 to index
    %c0_132 = arith.constant 0 : index
    %c0_133 = arith.constant 0 : index
    %268 = vector.load %arg13[%267, %c0_132, %c0_133] : memref<16x8x128xbf16, #tpu.memory_space<vmem>>, vector<1x8x128xbf16>
    %269 = vector.shape_cast %268 : vector<1x8x128xbf16> to vector<8x128xbf16>
    %cst_134 = arith.constant dense<0.000000e+00> : vector<8x128xf32>
    %270 = tpu.matmul %265, %269, %cst_134 {dimension_numbers = #tpu.dot_dimension_numbers<[1], [0], [0], [1], [0, 0, 1, 1], [], []>} : vector<8x8xbf16>, vector<8x128xbf16>, vector<8x128xf32> -> vector<8x128xf32>
    %271 = arith.addf %263, %270 : vector<8x128xf32>
    %272 = vector.extract_strided_slice %180 {offsets = [88, 0], sizes = [8, 8], strides = [1, 1]} : vector<128x8xf32> to vector<8x8xf32>
    %273 = arith.truncf %272 : vector<8x8xf32> to vector<8x8xbf16>
    %c11_i32_135 = arith.constant 11 : i32
    %274 = arith.addi %182, %c11_i32_135 : i32
    %275 = arith.index_cast %274 : i32 to index
    %c0_136 = arith.constant 0 : index
    %c0_137 = arith.constant 0 : index
    %276 = vector.load %arg13[%275, %c0_136, %c0_137] : memref<16x8x128xbf16, #tpu.memory_space<vmem>>, vector<1x8x128xbf16>
    %277 = vector.shape_cast %276 : vector<1x8x128xbf16> to vector<8x128xbf16>
    %cst_138 = arith.constant dense<0.000000e+00> : vector<8x128xf32>
    %278 = tpu.matmul %273, %277, %cst_138 {dimension_numbers = #tpu.dot_dimension_numbers<[1], [0], [0], [1], [0, 0, 1, 1], [], []>} : vector<8x8xbf16>, vector<8x128xbf16>, vector<8x128xf32> -> vector<8x128xf32>
    %279 = arith.addf %271, %278 : vector<8x128xf32>
    %280 = vector.extract_strided_slice %180 {offsets = [96, 0], sizes = [8, 8], strides = [1, 1]} : vector<128x8xf32> to vector<8x8xf32>
    %281 = arith.truncf %280 : vector<8x8xf32> to vector<8x8xbf16>
    %c12_i32_139 = arith.constant 12 : i32
    %282 = arith.addi %182, %c12_i32_139 : i32
    %283 = arith.index_cast %282 : i32 to index
    %c0_140 = arith.constant 0 : index
    %c0_141 = arith.constant 0 : index
    %284 = vector.load %arg13[%283, %c0_140, %c0_141] : memref<16x8x128xbf16, #tpu.memory_space<vmem>>, vector<1x8x128xbf16>
    %285 = vector.shape_cast %284 : vector<1x8x128xbf16> to vector<8x128xbf16>
    %cst_142 = arith.constant dense<0.000000e+00> : vector<8x128xf32>
    %286 = tpu.matmul %281, %285, %cst_142 {dimension_numbers = #tpu.dot_dimension_numbers<[1], [0], [0], [1], [0, 0, 1, 1], [], []>} : vector<8x8xbf16>, vector<8x128xbf16>, vector<8x128xf32> -> vector<8x128xf32>
    %287 = arith.addf %279, %286 : vector<8x128xf32>
    %288 = vector.extract_strided_slice %180 {offsets = [104, 0], sizes = [8, 8], strides = [1, 1]} : vector<128x8xf32> to vector<8x8xf32>
    %289 = arith.truncf %288 : vector<8x8xf32> to vector<8x8xbf16>
    %c13_i32_143 = arith.constant 13 : i32
    %290 = arith.addi %182, %c13_i32_143 : i32
    %291 = arith.index_cast %290 : i32 to index
    %c0_144 = arith.constant 0 : index
    %c0_145 = arith.constant 0 : index
    %292 = vector.load %arg13[%291, %c0_144, %c0_145] : memref<16x8x128xbf16, #tpu.memory_space<vmem>>, vector<1x8x128xbf16>
    %293 = vector.shape_cast %292 : vector<1x8x128xbf16> to vector<8x128xbf16>
    %cst_146 = arith.constant dense<0.000000e+00> : vector<8x128xf32>
    %294 = tpu.matmul %289, %293, %cst_146 {dimension_numbers = #tpu.dot_dimension_numbers<[1], [0], [0], [1], [0, 0, 1, 1], [], []>} : vector<8x8xbf16>, vector<8x128xbf16>, vector<8x128xf32> -> vector<8x128xf32>
    %295 = arith.addf %287, %294 : vector<8x128xf32>
    %296 = vector.extract_strided_slice %180 {offsets = [112, 0], sizes = [8, 8], strides = [1, 1]} : vector<128x8xf32> to vector<8x8xf32>
    %297 = arith.truncf %296 : vector<8x8xf32> to vector<8x8xbf16>
    %c14_i32_147 = arith.constant 14 : i32
    %298 = arith.addi %182, %c14_i32_147 : i32
    %299 = arith.index_cast %298 : i32 to index
    %c0_148 = arith.constant 0 : index
    %c0_149 = arith.constant 0 : index
    %300 = vector.load %arg13[%299, %c0_148, %c0_149] : memref<16x8x128xbf16, #tpu.memory_space<vmem>>, vector<1x8x128xbf16>
    %301 = vector.shape_cast %300 : vector<1x8x128xbf16> to vector<8x128xbf16>
    %cst_150 = arith.constant dense<0.000000e+00> : vector<8x128xf32>
    %302 = tpu.matmul %297, %301, %cst_150 {dimension_numbers = #tpu.dot_dimension_numbers<[1], [0], [0], [1], [0, 0, 1, 1], [], []>} : vector<8x8xbf16>, vector<8x128xbf16>, vector<8x128xf32> -> vector<8x128xf32>
    %303 = arith.addf %295, %302 : vector<8x128xf32>
    %304 = vector.extract_strided_slice %180 {offsets = [120, 0], sizes = [8, 8], strides = [1, 1]} : vector<128x8xf32> to vector<8x8xf32>
    %305 = arith.truncf %304 : vector<8x8xf32> to vector<8x8xbf16>
    %c15_i32_151 = arith.constant 15 : i32
    %306 = arith.addi %182, %c15_i32_151 : i32
    %307 = arith.index_cast %306 : i32 to index
    %c0_152 = arith.constant 0 : index
    %c0_153 = arith.constant 0 : index
    %308 = vector.load %arg13[%307, %c0_152, %c0_153] : memref<16x8x128xbf16, #tpu.memory_space<vmem>>, vector<1x8x128xbf16>
    %309 = vector.shape_cast %308 : vector<1x8x128xbf16> to vector<8x128xbf16>
    %cst_154 = arith.constant dense<0.000000e+00> : vector<8x128xf32>
    %310 = tpu.matmul %305, %309, %cst_154 {dimension_numbers = #tpu.dot_dimension_numbers<[1], [0], [0], [1], [0, 0, 1, 1], [], []>} : vector<8x8xbf16>, vector<8x128xbf16>, vector<8x128xf32> -> vector<8x128xf32>
    %311 = arith.addf %303, %310 : vector<8x128xf32>
    %312 = arith.addf %157, %311 : vector<8x128xf32>
    %313 = arith.addf %3, %312 : vector<8x128xf32>
    %c0_155 = arith.constant 0 : index
    %c0_156 = arith.constant 0 : index
    %314 = vector.load %arg15[%c0_155, %c0_156] : memref<8x128xf32, #tpu.memory_space<vmem>>, vector<8x128xf32>
    tpu.vector_store %arg15[%c0_155, %c0_156], %313 {strides = array<i32>} : memref<8x128xf32, #tpu.memory_space<vmem>>, vector<8x128xf32>,
    return
  }
  func.func @transform_0(%arg0: i32, %arg1: i32) -> (i32, i32, i32, i32) {
    %c0_i32 = arith.constant 0 : i32
    %c0_i32_0 = arith.constant 0 : i32
    %c0_i32_1 = arith.constant 0 : i32
    return %arg0, %arg1, %c0_i32, %c0_i32_0 : i32, i32, i32, i32
  }
  func.func @transform_1(%arg0: i32, %arg1: i32) -> (i32, i32, i32, i32) {
    %c0_i32 = arith.constant 0 : i32
    %c0_i32_0 = arith.constant 0 : i32
    %c0_i32_1 = arith.constant 0 : i32
    return %arg0, %arg1, %c0_i32, %c0_i32_0 : i32, i32, i32, i32
  }
  func.func @transform_2(%arg0: i32, %arg1: i32) -> (i32, i32) {
    %c0_i32 = arith.constant 0 : i32
    %c0_i32_0 = arith.constant 0 : i32
    %c0_i32_1 = arith.constant 0 : i32
    return %c0_i32, %c0_i32_0 : i32, i32
  }
  func.func @transform_3(%arg0: i32, %arg1: i32) -> (i32, i32) {
    %c0_i32 = arith.constant 0 : i32
    %c0_i32_0 = arith.constant 0 : i32
    %c0_i32_1 = arith.constant 0 : i32
    return %c0_i32, %c0_i32_0 : i32, i32
  }
  func.func @transform_4(%arg0: i32, %arg1: i32) -> (i32, i32) {
    %c0_i32 = arith.constant 0 : i32
    %c0_i32_0 = arith.constant 0 : i32
    %c0_i32_1 = arith.constant 0 : i32
    return %c0_i32, %c0_i32_0 : i32, i32
  }
  func.func @transform_5(%arg0: i32, %arg1: i32) -> (i32, i32) {
    %c0_i32 = arith.constant 0 : i32
    %c0_i32_0 = arith.constant 0 : i32
    %c0_i32_1 = arith.constant 0 : i32
    return %c0_i32, %c0_i32_0 : i32, i32
  }
  func.func @transform_6(%arg0: i32, %arg1: i32) -> (i32, i32, i32) {
    %c0_i32 = arith.constant 0 : i32
    %c0_i32_0 = arith.constant 0 : i32
    %c0_i32_1 = arith.constant 0 : i32
    %c0_i32_2 = arith.constant 0 : i32
    return %c0_i32, %c0_i32_0, %c0_i32_1 : i32, i32, i32
  }
  func.func @transform_7(%arg0: i32, %arg1: i32) -> (i32, i32) {
    %c0_i32 = arith.constant 0 : i32
    %c0_i32_0 = arith.constant 0 : i32
    %c0_i32_1 = arith.constant 0 : i32
    return %c0_i32, %c0_i32_0 : i32, i32
  }
  func.func @transform_8(%arg0: i32, %arg1: i32) -> (i32, i32) {
    %c0_i32 = arith.constant 0 : i32
    %c0_i32_0 = arith.constant 0 : i32
    %c0_i32_1 = arith.constant 0 : i32
    return %c0_i32, %c0_i32_0 : i32, i32
  }
  func.func @transform_9(%arg0: i32, %arg1: i32) -> (i32, i32) {
    %c0_i32 = arith.constant 0 : i32
    %c0_i32_0 = arith.constant 0 : i32
    %c0_i32_1 = arith.constant 0 : i32
    return %c0_i32, %c0_i32_0 : i32, i32
  }
  func.func @transform_10(%arg0: i32, %arg1: i32) -> (i32, i32) {
    %c0_i32 = arith.constant 0 : i32
    %c0_i32_0 = arith.constant 0 : i32
    %c0_i32_1 = arith.constant 0 : i32
    return %c0_i32, %c0_i32_0 : i32, i32
  }
  func.func @transform_11(%arg0: i32, %arg1: i32) -> (i32, i32, i32) {
    %c0_i32 = arith.constant 0 : i32
    %c0_i32_0 = arith.constant 0 : i32
    %c0_i32_1 = arith.constant 0 : i32
    %c0_i32_2 = arith.constant 0 : i32
    return %c0_i32, %c0_i32_0, %c0_i32_1 : i32, i32, i32
  }
  func.func @transform_12(%arg0: i32, %arg1: i32) -> (i32, i32) {
    %c0_i32 = arith.constant 0 : i32
    %c0_i32_0 = arith.constant 0 : i32
    %c0_i32_1 = arith.constant 0 : i32
    return %c0_i32, %c0_i32_0 : i32, i32
  }
  func.func @transform_13(%arg0: i32, %arg1: i32) -> (i32, i32) {
    %c0_i32 = arith.constant 0 : i32
    %c0_i32_0 = arith.constant 0 : i32
    return %arg0, %c0_i32 : i32, i32
  }
}

</mosaic_0001>

<bundles_post_ra>
// kernel: biconvnet_forward.1
= control target key start
LH: loop header
LB: loop body
LE: loop exit
PB: predicated region body
PF: predicated region fallthrough
CT: control target
= control target key end

     0   :  { %vm153_vm0 = vcmask 523264   ;;  %vm530_vm1 = vcmask 1043456   ;;  %v3190_v13 = vmov 0.0   ;;  %vm346_vm6 = vcmask 130048   ;;  %s3744_s2 = inlined_call_operand.vmem [shape: bf16[64,16], index: 2, kind: input, shape index: {}]   ;;  %s3745_s0 = inlined_call_operand.vmem [shape: bf16[1,1,128,64], index: 0, kind: input, shape index: {}]   ;;  %s3746_s4 = inlined_call_operand.vmem [shape: bf16[16,8], index: 4, kind: input, shape index: {}]   ;;  %s3747_s6 = inlined_call_operand.vmem [shape: bf16[16,8,128], index: 6, kind: input, shape index: {}]   ;;  %s3748_s3 = inlined_call_operand.vmem [shape: f32[1,16], index: 3, kind: input, shape index: {}]   ;;  %s3749_s7 = inlined_call_operand.vmem [shape: bf16[64,16], index: 7, kind: input, shape index: {}]   ;;  %s3750_s1 = inlined_call_operand.vmem [shape: bf16[1,1,128,64], index: 1, kind: input, shape index: {}]   ;;  %s3751_s5 = inlined_call_operand.vmem [shape: f32[1,8], index: 5, kind: input, shape index: {}]   ;;  %s3752_s9 = inlined_call_operand.vmem [shape: bf16[16,8], index: 9, kind: input, shape index: {}]   ;;  %s3753_s11 = inlined_call_operand.vmem [shape: bf16[16,8,128], index: 11, kind: input, shape index: {}]   ;;  %s3754_s8 = inlined_call_operand.vmem [shape: f32[1,16], index: 8, kind: input, shape index: {}]   ;;  %s3755_s10 = inlined_call_operand.vmem [shape: f32[1,8], index: 10, kind: input, shape index: {}]   ;;  %s3756_s12 = inlined_call_operand.vmem [shape: f32[1,128], index: 12, kind: input, shape index: {}]   ;;  %s3757_s13 = inlined_call_operand.vmem [shape: f32[8,128], index: 13, kind: output, shape index: {}]  }
   0x1   :  { %v3164_v0 = vld [vmem:[%s3744_s2] sm:$0xff]   ;;  %v3165_v1 = vld [vmem:[%s3744_s2 + $0x8] sm:$0xff]   ;;  %v3166_v2 = vld [vmem:[%s3744_s2 + $0x10] sm:$0xff]  }
   0x2   :  { %2886 = vmatprep.subr.bf16.mxu0 %v3164_v0  ;;  %v3168_v3 = vld [vmem:[%s3745_s0] sm:$0xff]   ;;  %v3167_v4 = vld [vmem:[%s3744_s2 + $0x18] sm:$0xff]   ;;  %v3169_v5 = vld [vmem:[%s3745_s0 + $0x8] sm:$0xff]  }
   0x3   :  { %2887 = vmatpush3.bf16.msra.mxu0 %v3164_v0  ;;  %2894 = vmatprep.mubr.msk.bf16.mxu0 %vm153_vm0, %v3168_v3  ;;  %v3170_v6 = vld [vmem:[%s3745_s0 + $0x10] sm:$0xff]   ;;  %v3171_v7 = vld [vmem:[%s3745_s0 + $0x18] sm:$0xff]   ;;  %v3172_v8 = vld [vmem:[%s3745_s0 + $0x20] sm:$0xff]  }
   0x4   :  { %2888 = vmatprep.subr.bf16.mxu0 %v3165_v1  ;;  %v3173_v9 = vld [vmem:[%s3745_s0 + $0x28] sm:$0xff]   ;;  %v3174_v10 = vld [vmem:[%s3745_s0 + $0x30] sm:$0xff]   ;;  %v3175_v11 = vld [vmem:[%s3745_s0 + $0x38] sm:$0xff]  }
   0x5   :  { %v3176_v12 = vld [vmem:[%s3746_s4] sm:$0xff]   ;;  %v2690_v14 = vld [vmem:[%s3747_s6 + $0x8] sm:$0xf] }
   0x6   :  { %2910 = vmatprep.subr.bf16.mxu1 %v3176_v12  ;;  %v629_v15 = vsel %vm530_vm1, %v2690_v14, 0  ;;  %v3319_v16 = vld [vmem:[%s3748_s3] ss:$0 sm:$0xff] }
   0x7   :  { %2889 = vmatpush3.bf16.msra.mxu0 %v3165_v1  ;;  %2911 = vmatpush3.bf16.msra.mxu1 %v3176_v12 }
   0x8   :  { %2890 = vmatprep.subr.bf16.mxu0 %v3166_v2  ;;  %2928 = vmatprep.subr.bf16.mxu1 %v3190_v13 }
   0xb   :  { %2891 = vmatpush3.bf16.msra.mxu0 %v3166_v2 }
   0xc   :  { %2892 = vmatprep.subr.bf16.mxu0 %v3167_v4 }
   0xf   :  { %2893 = vmatpush3.bf16.msra.mxu0 %v3167_v4 }
  0x10   :  { %2940 = vmatprep.subr.bf16.mxu0 %v3190_v13 }
  0x12   :  { %2895 = vmatmul.mubr.msk.bf16.vlgmr.msra.gmra.mrb[0].mxu0 %vm153_vm0, %v3169_v5 }
  0x13   :  { %2898 = vmatprep.mubr.msk.bf16.mxu0 %vm153_vm0, %v3170_v6  ;;  %2941 = vmatpush3.bf16.msra.mxu0 %v629_v15 }
  0x14   :  { %2952 = vmatprep.subr.bf16.mxu0 %v3190_v13 }
  0x1a   :  { %2899 = vmatmul.mubr.msk.bf16.gmra.mrb[4].mxu0 %vm153_vm0, %v3171_v7 }
  0x1b   :  { %2902 = vmatprep.mubr.msk.bf16.mxu0 %vm153_vm0, %v3172_v8 }
  0x22   :  { %2903 = vmatmul.mubr.msk.bf16.gmra.mrb[8].mxu0 %vm153_vm0, %v3173_v9 }
  0x23   :  { %2906 = vmatprep.mubr.msk.bf16.mxu0 %vm153_vm0, %v3174_v10 }
  0x2a   :  { %2907 = vmatmul.mubr.msk.bf16.gmra.mrb[12].mxu0 %vm153_vm0, %v3175_v11 }
  0xe5   :  { %v2896_v17 = vpop.f32.mrb[0].mxu0 }
  0xe6   :  { %v221_v18 = vadd.f32 %v2896_v17, %v3319_v16  ;;  %v212_v19 = vpop.f32.mrb[1].mxu0 }
  0xe7   :  { %v213_v20 = vadd.f32 %v3319_v16, %v212_v19  ;;  %v2897_v21 = vpop.f32.mrb[2].mxu0 }
  0xe8   :  { %v293_v22 = vmul.f32 0.01, %v221_v18  ;;  %v224_v23 = vadd.f32 %v2897_v21, %v3319_v16  ;;  %v215_v24 = vpop.f32.mrb[3].mxu0  ;;  %vm277_vm2 = vcmp.ge.f32.partialorder %v221_v18, 0.0 }
  0xe9   :  { %v291_v25 = vmul.f32 0.01, %v213_v20  ;;  %v216_v26 = vadd.f32 %v3319_v16, %v215_v24  ;;  %vm275_vm4 = vcmp.ge.f32.partialorder %v213_v20, 0.0 }
  0xea   :  { %vm278_vm3 = vcmp.ge.f32.partialorder %v224_v23, 0.0  ;;  %v294_v27 = vmul.f32 0.01, %v224_v23  ;;  %v309_v29 = vsel %vm277_vm2, %v221_v18, %v293_v22 }
  0xeb   :  { %v292_v28 = vmul.f32 0.01, %v216_v26  ;;  %vm276_vm5 = vcmp.ge.f32.partialorder %v216_v26, 0.0  ;;  %v307_v33 = vsel %vm275_vm4, %v213_v20, %v291_v25 }
  0xec   :  { %v310_v30 = vsel %vm278_vm3, %v224_v23, %v294_v27  ;;  %v2687_v27 = vld [vmem:[%s3747_s6 + $0x4] sm:$0xf] }
  0xed   :  { %v324_v31 = vpack.c.bf16 %v310_v30, %v309_v29  ;;  %v2900_v32 = vpop.f32.mrb[4].mxu0  ;;  %v308_v34 = vsel %vm276_vm5, %v216_v26, %v292_v28  ;;  %vm3191_vm5 = vmmov 0   ;;  %v3357_v28 = vld [vmem:[%s3751_s5] ss:$0 sm:$0xff] }
  0xee   :  { %v237_v35 = vadd.f32 %v2900_v32, %v3319_v16  ;;  %v228_v36 = vpop.f32.mrb[5].mxu0  ;;  %v323_v37 = vpack.c.bf16 %v308_v34, %v307_v33  ;;  %2942 = vmatprep.mubr.msk.bf16.mxu0 %vm3191_vm5, %v3190_v13  ;;  %v2694_v33 = vld [vmem:[%s3747_s6 + $0x10] sm:$0xf] }
  0xef   :  { %v229_v38 = vadd.f32 %v3319_v16, %v228_v36  ;;  %v2901_v39 = vpop.f32.mrb[6].mxu0 }
  0xf0   :  { %v297_v40 = vmul.f32 0.01, %v237_v35  ;;  %v240_v41 = vadd.f32 %v2901_v39, %v3319_v16  ;;  %v231_v42 = vpop.f32.mrb[7].mxu0  ;;  %2912 = vmatprep.mubr.msk.bf16.mxu1 %vm346_vm6, %v323_v37  ;;  %vm281_vm7 = vcmp.ge.f32.partialorder %v237_v35, 0.0 }
  0xf1   :  { %v295_v43 = vmul.f32 0.01, %v229_v38  ;;  %v232_v44 = vadd.f32 %v3319_v16, %v231_v42  ;;  %2913 = vmatmul.mubr.msk.bf16.vlgmr.msra.gmra.mrb[0].mxu1 %vm346_vm6, %v324_v31  ;;  %vm279_vm8 = vcmp.ge.f32.partialorder %v229_v38, 0.0  ;;  %v520_v42 = vld [vmem:[%s3747_s6] sm:$0xf] }
  0xf2   :  { %vm282_vm9 = vcmp.ge.f32.partialorder %v240_v41, 0.0  ;;  %v298_v45 = vmul.f32 0.01, %v240_v41  ;;  %v313_v47 = vsel %vm281_vm7, %v237_v35, %v297_v40 }
  0xf3   :  { %vm280_vm10 = vcmp.ge.f32.partialorder %v232_v44, 0.0  ;;  %v296_v46 = vmul.f32 0.01, %v232_v44  ;;  %v311_v49 = vsel %vm279_vm8, %v229_v38, %v295_v43  ;;  %vm526_vm8 = vcmask 64512  }
  0xf4   :  { %v314_v48 = vsel %vm282_vm9, %v240_v41, %v298_v45  ;;  %v733_v38 = vsel %vm530_vm1, %v2694_v33, 0 }
  0xf5   :  { %v326_v50 = vpack.c.bf16 %v314_v48, %v313_v47  ;;  %v312_v51 = vsel %vm280_vm10, %v232_v44, %v296_v46  ;;  %v2904_v52 = vpop.f32.mrb[8].mxu0  ;;  %v578_v47 = vsel %vm530_vm1, %v520_v42, 0 }
  0xf6   :  { %v325_v53 = vpack.c.bf16 %v312_v51, %v311_v49  ;;  %v253_v54 = vadd.f32 %v2904_v52, %v3319_v16  ;;  %v244_v55 = vpop.f32.mrb[9].mxu0 }
  0xf7   :  { %v245_v56 = vadd.f32 %v3319_v16, %v244_v55  ;;  %v2905_v57 = vpop.f32.mrb[10].mxu0 }
  0xf8   :  { %vm285_vm11 = vcmp.ge.f32.partialorder %v253_v54, 0.0  ;;  %v301_v58 = vmul.f32 0.01, %v253_v54  ;;  %v256_v59 = vadd.f32 %v2905_v57, %v3319_v16  ;;  %v247_v60 = vpop.f32.mrb[11].mxu0  ;;  %2916 = vmatprep.mubr.msk.bf16.mxu1 %vm346_vm6, %v325_v53 }
  0xf9   :  { %vm283_vm12 = vcmp.ge.f32.partialorder %v245_v56, 0.0  ;;  %v299_v61 = vmul.f32 0.01, %v245_v56  ;;  %v248_v62 = vadd.f32 %v3319_v16, %v247_v60  ;;  %2917 = vmatmul.mubr.msk.bf16.gmra.mrb[4].mxu1 %vm346_vm6, %v326_v50 }
  0xfa   :  { %v317_v63 = vsel %vm285_vm11, %v253_v54, %v301_v58  ;;  %vm286_vm13 = vcmp.ge.f32.partialorder %v256_v59, 0.0  ;;  %v302_v0 = vmul.f32 0.01, %v256_v59  ;;  %v2698_v54 = vld [vmem:[%s3747_s6 + $0x18] sm:$0xf] }
  0xfb   :  { %v315_v1 = vsel %vm283_vm12, %v245_v56, %v299_v61  ;;  %vm284_vm14 = vcmp.ge.f32.partialorder %v248_v62, 0.0  ;;  %v300_v2 = vmul.f32 0.01, %v248_v62  ;;  %v2692_v58 = vld [vmem:[%s3747_s6 + $0xc] sm:$0xf]  ;;  %v837_v60 = vsel %vm530_vm1, %v2698_v54, 0 }
  0xfc   :  { %v318_v3 = vsel %vm286_vm13, %v256_v59, %v302_v0 }
  0xfd   :  { %v328_v4 = vpack.c.bf16 %v318_v3, %v317_v63  ;;  %v316_v5 = vsel %vm284_vm14, %v248_v62, %v300_v2  ;;  %v2908_v6 = vpop.f32.mrb[12].mxu0 }
  0xfe   :  { %v327_v7 = vpack.c.bf16 %v316_v5, %v315_v1  ;;  %v269_v8 = vadd.f32 %v2908_v6, %v3319_v16  ;;  %v260_v9 = vpop.f32.mrb[13].mxu0  ;;  %v681_v1 = vsel %vm530_vm1, %v2692_v58, 0 }
  0xff   :  { %v261_v10 = vadd.f32 %v3319_v16, %v260_v9  ;;  %v2909_v11 = vpop.f32.mrb[14].mxu0 }
 0x100   :  { %2920 = vmatprep.mubr.msk.bf16.mxu1 %vm346_vm6, %v327_v7  ;;  %vm289_vm15 = vcmp.ge.f32.partialorder %v269_v8, 0.0  ;;  %v305_v12 = vmul.f32 0.01, %v269_v8  ;;  %v272_v14 = vadd.f32 %v2909_v11, %v3319_v16  ;;  %v263_v15 = vpop.f32.mrb[15].mxu0  ;;  %v2702_v7 = vld [vmem:[%s3747_s6 + $0x20] sm:$0xf] }
 0x101   :  { %2921 = vmatmul.mubr.msk.bf16.gmra.mrb[8].mxu1 %vm346_vm6, %v328_v4  ;;  %vm287_vm2 = vcmp.ge.f32.partialorder %v261_v10, 0.0  ;;  %v303_v17 = vmul.f32 0.01, %v261_v10  ;;  %v264_v18 = vadd.f32 %v3319_v16, %v263_v15  ;;  %v532_v16 = vsel %vm530_vm1, %v2687_v27, 0 }
 0x102   :  { %v321_v19 = vsel %vm289_vm15, %v269_v8, %v305_v12  ;;  %vm290_vm3 = vcmp.ge.f32.partialorder %v272_v14, 0.0  ;;  %v306_v20 = vmul.f32 0.01, %v272_v14  ;;  %2929 = vmatpush3.bf16.msra.mxu1 %v532_v16  ;;  %v941_v12 = vsel %vm530_vm1, %v2702_v7, 0 }
 0x103   :  { %v319_v21 = vsel %vm287_vm2, %v261_v10, %v303_v17  ;;  %vm288_vm4 = vcmp.ge.f32.partialorder %v264_v18, 0.0  ;;  %v304_v22 = vmul.f32 0.01, %v264_v18  ;;  %2934 = vmatprep.subr.bf16.mxu1 %v3190_v13  ;;  %v2696_v10 = vld [vmem:[%s3747_s6 + $0x14] sm:$0xf] }
 0x104   :  { %v322_v23 = vsel %vm290_vm3, %v272_v14, %v306_v20 }
 0x105   :  { %v330_v24 = vpack.c.bf16 %v322_v23, %v321_v19  ;;  %v320_v25 = vsel %vm288_vm4, %v264_v18, %v304_v22  ;;  %v785_v19 = vsel %vm530_vm1, %v2696_v10, 0 }
 0x106   :  { %v329_v26 = vpack.c.bf16 %v320_v25, %v319_v21 }
 0x108   :  { %2924 = vmatprep.mubr.msk.bf16.mxu1 %vm346_vm6, %v329_v26  ;;  %v2706_v26 = vld [vmem:[%s3747_s6 + $0x28] sm:$0xf] }
 0x109   :  { %2925 = vmatmul.mubr.msk.bf16.gmra.mrb[12].mxu1 %vm346_vm6, %v330_v24 }
 0x10a   :  { %2930 = vmatprep.mubr.msk.bf16.mxu1 %vm3191_vm5, %v3190_v13 }
 0x1c4   :  { %v2914_v29 = vpop.f32.mrb[0].mxu1 }
 0x1c5   :  { %v414_v30 = vadd.f32 %v2914_v29, %v3357_v28  ;;  %v405_v31 = vpop.f32.mrb[1].mxu1  ;;  %v2700_v29 = vld [vmem:[%s3747_s6 + $0x1c] sm:$0xf] }
 0x1c6   :  { %v2915_v32 = vpop.f32.mrb[2].mxu1  ;;  %v406_v40 = vadd.f32 %v3357_v28, %v405_v31  ;;  %v1045_v31 = vsel %vm530_vm1, %v2706_v26, 0 }
 0x1c7   :  { %vm470_vm7 = vcmp.ge.f32.partialorder %v414_v30, 0.0  ;;  %v486_v34 = vmul.f32 0.01, %v414_v30  ;;  %v408_v35 = vpop.f32.mrb[3].mxu1  ;;  %v417_v56 = vadd.f32 %v2915_v32, %v3357_v28 }
 0x1c8   :  { %v409_v36 = vadd.f32 %v3357_v28, %v408_v35  ;;  %v484_v48 = vmul.f32 0.01, %v406_v40  ;;  %vm468_vm10 = vcmp.ge.f32.partialorder %v406_v40, 0.0 }
 0x1c9   :  { %v502_v37 = vsel %vm470_vm7, %v414_v30, %v486_v34  ;;  %v487_v2 = vmul.f32 0.01, %v417_v56  ;;  %vm471_vm13 = vcmp.ge.f32.partialorder %v417_v56, 0.0  ;;  %v889_v34 = vsel %vm530_vm1, %v2700_v29, 0 }
 0x1ca   :  { %v620_v39 = vpack.c.bf16 %v502_v37, %v502_v37  ;;  %vm469_vm9 = vcmp.ge.f32.partialorder %v409_v36, 0.0  ;;  %v485_v41 = vmul.f32 0.01, %v409_v36  ;;  %v500_v55 = vsel %vm468_vm10, %v406_v40, %v484_v48 }
 0x1cb   :  { %v517_v63 = vpack.c.bf16 %v500_v55, %v500_v55  ;;  %v503_v8 = vsel %vm471_vm13, %v417_v56, %v487_v2  ;;  %v3177_v56 = vld [vmem:[%s3749_s7] sm:$0xff]  }
 0x1cc   :  { %v501_v43 = vsel %vm469_vm9, %v409_v36, %v485_v41  ;;  %v2918_v44 = vpop.f32.mrb[4].mxu1  ;;  %2943 = vmatmul.mubr.msk.bf16.vlgmr.msra.gmra.mrb[16].mxu0 %vm526_vm8, %v620_v39  ;;  %v672_v17 = vpack.c.bf16 %v503_v8, %v503_v8  ;;  %v2704_v41 = vld [vmem:[%s3747_s6 + $0x24] sm:$0xf]  ;;  %v2716_v8 = vld [vmem:[%s3747_s6 + $0x3c] sm:$0xf] }
 0x1cd   :  { %v521_v45 = vpack.c.bf16 %v501_v43, %v501_v43  ;;  %v421_v46 = vpop.f32.mrb[5].mxu1  ;;  %2953 = vmatpush3.bf16.msra.mxu0 %v733_v38  ;;  %2954 = vmatprep.mubr.msk.bf16.mxu0 %vm3191_vm5, %v3190_v13  ;;  %v430_v52 = vadd.f32 %v2918_v44, %v3357_v28  ;;  %v2710_v38 = vld [vmem:[%s3747_s6 + $0x30] sm:$0xf] }
 0x1ce   :  { %v422_v49 = vadd.f32 %v3357_v28, %v421_v46  ;;  %v3374_v50 = vpop.f32.mrb[6].mxu1  ;;  %2964 = vmatprep.subr.bf16.mxu0 %v3190_v13  ;;  %v1149_v43 = vsel %vm530_vm1, %v2710_v38, 0  ;;  %v993_v46 = vsel %vm530_vm1, %v2704_v41, 0 }
 0x1cf   :  { %v424_v51 = vpop.f32.mrb[7].mxu1  ;;  %2931 = vmatmul.mubr.msk.bf16.vlgmr.msra.gmra.mrb[16].mxu1 %vm526_vm8, %v521_v45  ;;  %v490_v61 = vmul.f32 0.01, %v430_v52  ;;  %vm474_vm12 = vcmp.ge.f32.partialorder %v430_v52, 0.0  ;;  %v433_v27 = vadd.f32 %v3374_v50, %v3357_v28  ;;  %v2714_v50 = vld [vmem:[%s3747_s6 + $0x38] sm:$0xf] }
 0x1d0   :  { %vm472_vm11 = vcmp.ge.f32.partialorder %v422_v49, 0.0  ;;  %v488_v53 = vmul.f32 0.01, %v422_v49  ;;  %2935 = vmatpush3.bf16.msra.mxu1 %v578_v47  ;;  %2936 = vmatprep.mubr.msk.bf16.mxu1 %vm3191_vm5, %v3190_v13  ;;  %v425_v9 = vadd.f32 %v3357_v28, %v424_v51  ;;  %v1253_v55 = vsel %vm530_vm1, %v2714_v50, 0 }
 0x1d1   :  { %2946 = vmatprep.subr.bf16.mxu1 %v3190_v13  ;;  %v506_v5 = vsel %vm474_vm12, %v430_v52, %v490_v61  ;;  %v491_v35 = vmul.f32 0.01, %v433_v27  ;;  %vm475_vm3 = vcmp.ge.f32.partialorder %v433_v27, 0.0 }
 0x1d2   :  { %v504_v57 = vsel %vm472_vm11, %v422_v49, %v488_v53  ;;  %v828_v11 = vpack.c.bf16 %v506_v5, %v506_v5  ;;  %v489_v20 = vmul.f32 0.01, %v425_v9  ;;  %vm473_vm15 = vcmp.ge.f32.partialorder %v425_v9, 0.0  ;;  %v2708_v53 = vld [vmem:[%s3747_s6 + $0x2c] sm:$0xf] }
 0x1d3   :  { %v724_v59 = vpack.c.bf16 %v504_v57, %v504_v57  ;;  %v507_v39 = vsel %vm475_vm3, %v433_v27, %v491_v35 }
 0x1d4   :  { %v2922_v62 = vpop.f32.mrb[8].mxu1  ;;  %v505_v16 = vsel %vm473_vm15, %v425_v9, %v489_v20  ;;  %v880_v45 = vpack.c.bf16 %v507_v39, %v507_v39  ;;  %v3180_v9 = vld [vmem:[%s3749_s7 + $0x18] sm:$0xff]   ;;  %v3185_v20 = vld [vmem:[%s3750_s1 + $0x20] sm:$0xff]  }
 0x1d5   :  { %v437_v0 = vpop.f32.mrb[9].mxu1  ;;  %2955 = vmatmul.mubr.msk.bf16.vlgmr.msra.gmra.mrb[20].mxu0 %vm526_vm8, %v724_v59  ;;  %v446_v24 = vadd.f32 %v2922_v62, %v3357_v28  ;;  %v776_v33 = vpack.c.bf16 %v505_v16, %v505_v16  ;;  %v1097_v59 = vsel %vm530_vm1, %v2708_v53, 0 }
 0x1d6   :  { %2965 = vmatpush3.bf16.msra.mxu0 %v837_v60  ;;  %v3392_v3 = vpop.f32.mrb[10].mxu1  ;;  %2966 = vmatprep.mubr.msk.bf16.mxu0 %vm3191_vm5, %v3190_v13  ;;  %v438_v6 = vadd.f32 %v3357_v28, %v437_v0  ;;  %v2712_v0 = vld [vmem:[%s3747_s6 + $0x34] sm:$0xf] }
 0x1d7   :  { %v440_v4 = vpop.f32.mrb[11].mxu1  ;;  %2937 = vmatmul.mubr.msk.bf16.vlgmr.msra.gmra.mrb[20].mxu1 %vm526_vm8, %v517_v63  ;;  %2976 = vmatprep.subr.bf16.mxu0 %v3190_v13  ;;  %v494_v32 = vmul.f32 0.01, %v446_v24  ;;  %vm478_vm2 = vcmp.ge.f32.partialorder %v446_v24, 0.0  ;;  %v449_v51 = vadd.f32 %v3392_v3, %v3357_v28  ;;  %v3178_v3 = vld [vmem:[%s3749_s7 + $0x8] sm:$0xff]   ;;  %v1201_v5 = vsel %vm530_vm1, %v2712_v0, 0 }
 0x1d8   :  { %2947 = vmatpush3.bf16.msra.mxu1 %v681_v1  ;;  %2948 = vmatprep.mubr.msk.bf16.mxu1 %vm3191_vm5, %v3190_v13  ;;  %v492_v14 = vmul.f32 0.01, %v438_v6  ;;  %vm476_vm14 = vcmp.ge.f32.partialorder %v438_v6, 0.0  ;;  %v441_v40 = vadd.f32 %v3357_v28, %v440_v4  ;;  %v3181_v1 = vld [vmem:[%s3750_s1] sm:$0xff]  }
 0x1d9   :  { %2958 = vmatprep.subr.bf16.mxu1 %v3190_v13  ;;  %v510_v36 = vsel %vm478_vm2, %v446_v24, %v494_v32  ;;  %v495_v60 = vmul.f32 0.01, %v449_v51  ;;  %vm479_vm10 = vcmp.ge.f32.partialorder %v449_v51, 0.0  ;;  %v3189_v24 = vld [vmem:[%s3752_s9] sm:$0xff]  }
 0x1da   :  { %v508_v25 = vsel %vm476_vm14, %v438_v6, %v492_v14  ;;  %v1036_v42 = vpack.c.bf16 %v510_v36, %v510_v36  ;;  %v493_v47 = vmul.f32 0.01, %v441_v40  ;;  %vm477_vm7 = vcmp.ge.f32.partialorder %v441_v40, 0.0  ;;  %v3182_v14 = vld [vmem:[%s3750_s1 + $0x8] sm:$0xff]  }
 0x1db   :  { %v932_v30 = vpack.c.bf16 %v508_v25, %v508_v25  ;;  %v511_v62 = vsel %vm479_vm10, %v449_v51, %v495_v60  ;;  %v1807_v25 = vld [vmem:[%s3753_s11] sm:$0xf] }
 0x1dc   :  { %v2926_v15 = vpop.f32.mrb[12].mxu1  ;;  %v509_v52 = vsel %vm477_vm7, %v441_v40, %v493_v47  ;;  %v1088_v4 = vpack.c.bf16 %v511_v62, %v511_v62  ;;  %v1862_v26 = vsel %vm530_vm1, %v1807_v25, 0 }
 0x1dd   :  { %2967 = vmatmul.mubr.msk.bf16.vlgmr.msra.gmra.mrb[24].mxu0 %vm526_vm8, %v828_v11  ;;  %v453_v18 = vpop.f32.mrb[13].mxu1  ;;  %v462_v48 = vadd.f32 %v2926_v15, %v3357_v28  ;;  %v984_v58 = vpack.c.bf16 %v509_v52, %v509_v52  ;;  %v1305_v11 = vsel %vm530_vm1, %v2716_v8, 0 }
 0x1de   :  { %2977 = vmatpush3.bf16.msra.mxu0 %v941_v12  ;;  %v2927_v21 = vpop.f32.mrb[14].mxu1  ;;  %2978 = vmatprep.mubr.msk.bf16.mxu0 %vm3191_vm5, %v3190_v13  ;;  %v454_v37 = vadd.f32 %v3357_v28, %v453_v18 }
 0x1df   :  { %2949 = vmatmul.mubr.msk.bf16.vlgmr.msra.gmra.mrb[24].mxu1 %vm526_vm8, %v672_v17  ;;  %v3416_v22 = vadd.f32 %v2927_v21, %v3357_v28  ;;  %v3418_v23 = vpop.f32.mrb[15].mxu1  ;;  %2988 = vmatprep.subr.bf16.mxu0 %v3190_v13  ;;  %v498_v57 = vmul.f32 0.01, %v462_v48  ;;  %vm482_vm9 = vcmp.ge.f32.partialorder %v462_v48, 0.0  ;;  %v3183_v17 = vld [vmem:[%s3750_s1 + $0x10] sm:$0xff]   ;;  %v3186_v21 = vld [vmem:[%s3750_s1 + $0x28] sm:$0xff]  }
 0x1e0   :  { %2959 = vmatpush3.bf16.msra.mxu1 %v785_v19  ;;  %2960 = vmatprep.mubr.msk.bf16.mxu1 %vm3191_vm5, %v3190_v13  ;;  %v496_v44 = vmul.f32 0.01, %v454_v37  ;;  %vm480_vm4 = vcmp.ge.f32.partialorder %v454_v37, 0.0  ;;  %v457_v63 = vadd.f32 %v3357_v28, %v3418_v23  ;;  %v3179_v28 = vld [vmem:[%s3749_s7 + $0x10] sm:$0xff]   ;;  %v3184_v19 = vld [vmem:[%s3750_s1 + $0x18] sm:$0xff]  }
 0x1e1   :  { %2970 = vmatprep.subr.bf16.mxu1 %v3190_v13  ;;  %v514_v61 = vsel %vm482_vm9, %v462_v48, %v498_v57  ;;  %v499_v12 = vmul.f32 0.01, %v3416_v22  ;;  %vm483_vm12 = vcmp.ge.f32.partialorder %v3416_v22, 0.0  ;;  %v3188_v23 = vld [vmem:[%s3750_s1 + $0x38] sm:$0xff]  }
 0x1e2   :  { %v512_v49 = vsel %vm480_vm4, %v454_v37, %v496_v44  ;;  %v1244_v2 = vpack.c.bf16 %v514_v61, %v514_v61  ;;  %v497_v6 = vmul.f32 0.01, %v457_v63  ;;  %vm481_vm11 = vcmp.ge.f32.partialorder %v457_v63, 0.0 }
 0x1e3   :  { %v1140_v54 = vpack.c.bf16 %v512_v49, %v512_v49  ;;  %v515_v15 = vsel %vm483_vm12, %v3416_v22, %v499_v12  ;;  %v3187_v22 = vld [vmem:[%s3750_s1 + $0x30] sm:$0xff]  }
 0x1e4   :  { %v513_v7 = vsel %vm481_vm11, %v457_v63, %v497_v6  ;;  %v1296_v18 = vpack.c.bf16 %v515_v15, %v515_v15 }
 0x1e5   :  { %2979 = vmatmul.mubr.msk.bf16.vlgmr.msra.gmra.mrb[28].mxu0 %vm526_vm8, %v932_v30  ;;  %v1192_v10 = vpack.c.bf16 %v513_v7, %v513_v7 }
 0x1e6   :  { %2989 = vmatpush3.bf16.msra.mxu0 %v1045_v31  ;;  %2990 = vmatprep.mubr.msk.bf16.mxu0 %vm3191_vm5, %v3190_v13 }
 0x1e7   :  { %2961 = vmatmul.mubr.msk.bf16.vlgmr.msra.gmra.mrb[28].mxu1 %vm526_vm8, %v776_v33  ;;  %3000 = vmatprep.subr.bf16.mxu0 %v3190_v13 }
 0x1e8   :  { %2971 = vmatpush3.bf16.msra.mxu1 %v889_v34  ;;  %2972 = vmatprep.mubr.msk.bf16.mxu1 %vm3191_vm5, %v3190_v13 }
 0x1e9   :  { %2982 = vmatprep.subr.bf16.mxu1 %v3190_v13 }
 0x1ed   :  { %2991 = vmatmul.mubr.msk.bf16.vlgmr.msra.gmra.mrb[32].mxu0 %vm526_vm8, %v1036_v42 }
 0x1ee   :  { %3001 = vmatpush3.bf16.msra.mxu0 %v1149_v43  ;;  %3002 = vmatprep.mubr.msk.bf16.mxu0 %vm3191_vm5, %v3190_v13 }
 0x1ef   :  { %2973 = vmatmul.mubr.msk.bf16.vlgmr.msra.gmra.mrb[32].mxu1 %vm526_vm8, %v880_v45  ;;  %3012 = vmatprep.subr.bf16.mxu0 %v3190_v13 }
 0x1f0   :  { %2983 = vmatpush3.bf16.msra.mxu1 %v993_v46  ;;  %2984 = vmatprep.mubr.msk.bf16.mxu1 %vm3191_vm5, %v3190_v13 }
 0x1f1   :  { %2994 = vmatprep.subr.bf16.mxu1 %v3190_v13 }
 0x1f5   :  { %3003 = vmatmul.mubr.msk.bf16.vlgmr.msra.gmra.mrb[36].mxu0 %vm526_vm8, %v1140_v54 }
 0x1f6   :  { %3013 = vmatpush3.bf16.msra.mxu0 %v1253_v55  ;;  %3014 = vmatprep.mubr.msk.bf16.mxu0 %vm3191_vm5, %v3190_v13 }
 0x1f7   :  { %2985 = vmatmul.mubr.msk.bf16.vlgmr.msra.gmra.mrb[36].mxu1 %vm526_vm8, %v984_v58  ;;  %3024 = vmatprep.subr.bf16.mxu0 %v3177_v56 }
 0x1f8   :  { %2995 = vmatpush3.bf16.msra.mxu1 %v1097_v59  ;;  %2996 = vmatprep.mubr.msk.bf16.mxu1 %vm3191_vm5, %v3190_v13 }
 0x1f9   :  { %3006 = vmatprep.subr.bf16.mxu1 %v3190_v13 }
 0x1fd   :  { %3015 = vmatmul.mubr.msk.bf16.vlgmr.msra.gmra.mrb[40].mxu0 %vm526_vm8, %v1244_v2 }
 0x1fe   :  { %3025 = vmatpush3.bf16.msra.mxu0 %v3177_v56  ;;  %3032 = vmatprep.mubr.msk.bf16.mxu0 %vm153_vm0, %v3181_v1 }
 0x1ff   :  { %2997 = vmatmul.mubr.msk.bf16.vlgmr.msra.gmra.mrb[40].mxu1 %vm526_vm8, %v1088_v4  ;;  %3026 = vmatprep.subr.bf16.mxu0 %v3178_v3 }
 0x200   :  { %3007 = vmatpush3.bf16.msra.mxu1 %v1201_v5  ;;  %3008 = vmatprep.mubr.msk.bf16.mxu1 %vm3191_vm5, %v3190_v13 }
 0x201   :  { %3018 = vmatprep.subr.bf16.mxu1 %v3190_v13 }
 0x202   :  { %3027 = vmatpush3.bf16.msra.mxu0 %v3178_v3 }
 0x203   :  { %3028 = vmatprep.subr.bf16.mxu0 %v3179_v28 }
 0x206   :  { %3029 = vmatpush3.bf16.msra.mxu0 %v3179_v28 }
 0x207   :  { %3009 = vmatmul.mubr.msk.bf16.vlgmr.msra.gmra.mrb[44].mxu1 %vm526_vm8, %v1192_v10  ;;  %3030 = vmatprep.subr.bf16.mxu0 %v3180_v9 }
 0x208   :  { %3019 = vmatpush3.bf16.msra.mxu1 %v1305_v11  ;;  %3020 = vmatprep.mubr.msk.bf16.mxu1 %vm3191_vm5, %v3190_v13 }
 0x209   :  { %3048 = vmatprep.subr.bf16.mxu1 %v3189_v24 }
 0x20a   :  { %3031 = vmatpush3.bf16.msra.mxu0 %v3180_v9 }
 0x20b   :  { %3072 = vmatprep.subr.bf16.mxu0 %v3190_v13 }
 0x20d   :  { %3033 = vmatmul.mubr.msk.bf16.vlgmr.msra.gmra.mrb[44].mxu0 %vm153_vm0, %v3182_v14 }
 0x20e   :  { %3036 = vmatprep.mubr.msk.bf16.mxu0 %vm153_vm0, %v3183_v17  ;;  %3073 = vmatpush3.bf16.msra.mxu0 %v1862_v26 }
 0x20f   :  { %3021 = vmatmul.mubr.msk.bf16.vlgmr.msra.gmra.mrb[48].mxu1 %vm526_vm8, %v1296_v18  ;;  %3084 = vmatprep.subr.bf16.mxu0 %v3190_v13 }
 0x210   :  { %3049 = vmatpush3.bf16.msra.mxu1 %v3189_v24 }
 0x211   :  { %3066 = vmatprep.subr.bf16.mxu1 %v3190_v13 }
 0x215   :  { %3037 = vmatmul.mubr.msk.bf16.gmra.mrb[48].mxu0 %vm153_vm0, %v3184_v19 }
 0x216   :  { %3040 = vmatprep.mubr.msk.bf16.mxu0 %vm153_vm0, %v3185_v20 }
 0x21d   :  { %3041 = vmatmul.mubr.msk.bf16.gmra.mrb[52].mxu0 %vm153_vm0, %v3186_v21 }
 0x21e   :  { %3044 = vmatprep.mubr.msk.bf16.mxu0 %vm153_vm0, %v3187_v22 }
 0x225   :  { %3045 = vmatmul.mubr.msk.bf16.gmra.mrb[56].mxu0 %vm153_vm0, %v3188_v23 }
 0x226   :  { %3074 = vmatprep.mubr.msk.bf16.mxu0 %vm3191_vm5, %v3190_v13 }
 0x29f   :  { %v665_v27 = vpop.f32.mrb[16].mxu0 }
 0x2a0   :  { %v2944_v16 = vpop.f32.mrb[17].mxu0 }
 0x2a1   :  { %v668_v29 = vpop.f32.mrb[18].mxu0 }
 0x2a2   :  { %v568_v30 = vpop.f32.mrb[16].mxu1  ;;  %v2945_v31 = vpop.f32.mrb[19].mxu0 }
 0x2a3   :  { %v2932_v32 = vpop.f32.mrb[17].mxu1 }
 0x2a4   :  { %v571_v33 = vpop.f32.mrb[18].mxu1 }
 0x2a5   :  { %v2933_v34 = vpop.f32.mrb[19].mxu1 }
 0x2a8   :  { %v769_v35 = vpop.f32.mrb[20].mxu0 }
 0x2a9   :  { %v2956_v36 = vpop.f32.mrb[21].mxu0 }
 0x2aa   :  { %v614_v37 = vpop.f32.mrb[20].mxu1  ;;  %v772_v38 = vpop.f32.mrb[22].mxu0 }
 0x2ab   :  { %v615_v39 = vadd.f32 %v614_v37, %v568_v30  ;;  %v2938_v40 = vpop.f32.mrb[21].mxu1  ;;  %v2957_v41 = vpop.f32.mrb[23].mxu0  ;;  %v3560_v38 = vld [vmem:[%s3754_s8] ss:$0 sm:$0xff] }
 0x2ac   :  { %v617_v42 = vpop.f32.mrb[22].mxu1 }
 0x2ad   :  { %v2939_v43 = vpop.f32.mrb[23].mxu1  ;;  %v671_v44 = vadd.f32 %v665_v27, %v615_v39 }
 0x2b0   :  { %v873_v45 = vpop.f32.mrb[24].mxu0 }
 0x2b1   :  { %v2968_v46 = vpop.f32.mrb[25].mxu0 }
 0x2b2   :  { %v717_v47 = vpop.f32.mrb[24].mxu1  ;;  %v876_v48 = vpop.f32.mrb[26].mxu0 }
 0x2b3   :  { %v723_v49 = vadd.f32 %v717_v47, %v671_v44  ;;  %v2950_v50 = vpop.f32.mrb[25].mxu1  ;;  %v2969_v51 = vpop.f32.mrb[27].mxu0 }
 0x2b4   :  { %v720_v52 = vpop.f32.mrb[26].mxu1 }
 0x2b5   :  { %v2951_v53 = vpop.f32.mrb[27].mxu1  ;;  %v775_v54 = vadd.f32 %v769_v35, %v723_v49 }
 0x2b8   :  { %v977_v55 = vpop.f32.mrb[28].mxu0 }
 0x2b9   :  { %v2980_v56 = vpop.f32.mrb[29].mxu0 }
 0x2ba   :  { %v821_v57 = vpop.f32.mrb[28].mxu1  ;;  %v980_v58 = vpop.f32.mrb[30].mxu0 }
 0x2bb   :  { %v827_v59 = vadd.f32 %v821_v57, %v775_v54  ;;  %v2962_v60 = vpop.f32.mrb[29].mxu1  ;;  %v2981_v61 = vpop.f32.mrb[31].mxu0  ;;  %v2749_v58 = vld [vmem:[%s3753_s11 + $0x4] sm:$0xf] }
 0x2bc   :  { %v824_v62 = vpop.f32.mrb[30].mxu1 }
 0x2bd   :  { %v2963_v63 = vpop.f32.mrb[31].mxu1  ;;  %v879_v0 = vadd.f32 %v873_v45, %v827_v59 }
 0x2c0   :  { %v1081_v1 = vpop.f32.mrb[32].mxu0 }
 0x2c1   :  { %v2992_v2 = vpop.f32.mrb[33].mxu0 }
 0x2c2   :  { %v925_v3 = vpop.f32.mrb[32].mxu1  ;;  %v1084_v4 = vpop.f32.mrb[34].mxu0 }
 0x2c3   :  { %v931_v5 = vadd.f32 %v925_v3, %v879_v0  ;;  %v2974_v6 = vpop.f32.mrb[33].mxu1  ;;  %v2993_v28 = vpop.f32.mrb[35].mxu0  ;;  %v1816_v4 = vsel %vm530_vm1, %v2749_v58, 0 }
 0x2c4   :  { %v928_v7 = vpop.f32.mrb[34].mxu1 }
 0x2c5   :  { %v2975_v8 = vpop.f32.mrb[35].mxu1  ;;  %v983_v9 = vadd.f32 %v977_v55, %v931_v5 }
 0x2c8   :  { %v1185_v10 = vpop.f32.mrb[36].mxu0 }
 0x2c9   :  { %v3004_v11 = vpop.f32.mrb[37].mxu0 }
 0x2ca   :  { %v1029_v12 = vpop.f32.mrb[36].mxu1  ;;  %v1188_v14 = vpop.f32.mrb[38].mxu0 }
 0x2cb   :  { %v1035_v15 = vadd.f32 %v1029_v12, %v983_v9  ;;  %v2986_v17 = vpop.f32.mrb[37].mxu1  ;;  %v3005_v18 = vpop.f32.mrb[39].mxu0 }
 0x2cc   :  { %v1032_v19 = vpop.f32.mrb[38].mxu1 }
 0x2cd   :  { %v2987_v20 = vpop.f32.mrb[39].mxu1  ;;  %v1087_v21 = vadd.f32 %v1081_v1, %v1035_v15 }
 0x2d0   :  { %v1289_v22 = vpop.f32.mrb[40].mxu0 }
 0x2d1   :  { %v3016_v23 = vpop.f32.mrb[41].mxu0 }
 0x2d2   :  { %v1133_v24 = vpop.f32.mrb[40].mxu1  ;;  %v1292_v25 = vpop.f32.mrb[42].mxu0 }
 0x2d3   :  { %v1139_v26 = vadd.f32 %v1133_v24, %v1087_v21  ;;  %v2998_v27 = vpop.f32.mrb[41].mxu1  ;;  %v3017_v16 = vpop.f32.mrb[43].mxu0 }
 0x2d4   :  { %v1136_v29 = vpop.f32.mrb[42].mxu1 }
 0x2d5   :  { %v2999_v30 = vpop.f32.mrb[43].mxu1  ;;  %v1191_v31 = vadd.f32 %v1185_v10, %v1139_v26 }
 0x2da   :  { %v1237_v32 = vpop.f32.mrb[44].mxu1 }
 0x2db   :  { %v1243_v33 = vadd.f32 %v1237_v32, %v1191_v31  ;;  %v3010_v34 = vpop.f32.mrb[45].mxu1 }
 0x2dc   :  { %v1240_v35 = vpop.f32.mrb[46].mxu1 }
 0x2dd   :  { %v3011_v36 = vpop.f32.mrb[47].mxu1  ;;  %v1295_v37 = vadd.f32 %v1289_v22, %v1243_v33 }
 0x2e0   :  { %v3034_v39 = vpop.f32.mrb[44].mxu0 }
 0x2e1   :  { %v1510_v40 = vadd.f32 %v3034_v39, %v3560_v38  ;;  %v1501_v41 = vpop.f32.mrb[45].mxu0 }
 0x2e2   :  { %v1502_v42 = vadd.f32 %v3560_v38, %v1501_v41  ;;  %v3035_v43 = vpop.f32.mrb[46].mxu0  ;;  %v1341_v44 = vpop.f32.mrb[48].mxu1 }
 0x2e3   :  { %v1582_v45 = vmul.f32 0.01, %v1510_v40  ;;  %v1513_v46 = vadd.f32 %v3035_v43, %v3560_v38  ;;  %v3565_v47 = vadd.f32 %v1341_v44, %v1295_v37  ;;  %v1504_v48 = vpop.f32.mrb[47].mxu0  ;;  %v3022_v49 = vpop.f32.mrb[49].mxu1  ;;  %vm1566_vm0 = vcmp.ge.f32.partialorder %v1510_v40, 0.0 }
 0x2e4   :  { %v1580_v50 = vmul.f32 0.01, %v1502_v42  ;;  %v1505_v51 = vadd.f32 %v3560_v38, %v1504_v48  ;;  %v1344_v52 = vpop.f32.mrb[50].mxu1  ;;  %vm1564_vm13 = vcmp.ge.f32.partialorder %v1502_v42, 0.0 }
 0x2e5   :  { %vm1567_vm14 = vcmp.ge.f32.partialorder %v1513_v46, 0.0  ;;  %v1583_v53 = vmul.f32 0.01, %v1513_v46  ;;  %v3023_v54 = vpop.f32.mrb[51].mxu1  ;;  %v1598_v56 = vsel %vm1566_vm0, %v1510_v40, %v1582_v45 }
 0x2e6   :  { %vm1565_vm15 = vcmp.ge.f32.partialorder %v1505_v51, 0.0  ;;  %v1581_v55 = vmul.f32 0.01, %v1505_v51  ;;  %v1596_v59 = vsel %vm1564_vm13, %v1502_v42, %v1580_v50 }
 0x2e7   :  { %v1599_v57 = vsel %vm1567_vm14, %v1513_v46, %v1583_v53 }
 0x2e8   :  { %v1613_v60 = vpack.c.bf16 %v1599_v57, %v1598_v56  ;;  %v1597_v61 = vsel %vm1565_vm15, %v1505_v51, %v1581_v55  ;;  %v3038_v62 = vpop.f32.mrb[48].mxu0 }
 0x2e9   :  { %v1612_v63 = vpack.c.bf16 %v1597_v61, %v1596_v59  ;;  %v1526_v0 = vadd.f32 %v3038_v62, %v3560_v38  ;;  %v1517_v1 = vpop.f32.mrb[49].mxu0 }
 0x2ea   :  { %v1518_v2 = vadd.f32 %v3560_v38, %v1517_v1  ;;  %v3039_v3 = vpop.f32.mrb[50].mxu0  ;;  %v2754_v1 = vld [vmem:[%s3753_s11 + $0xc] sm:$0xf] }
 0x2eb   :  { %vm1570_vm2 = vcmp.ge.f32.partialorder %v1526_v0, 0.0  ;;  %v1586_v5 = vmul.f32 0.01, %v1526_v0  ;;  %v1529_v6 = vadd.f32 %v3039_v3, %v3560_v38  ;;  %v1520_v28 = vpop.f32.mrb[51].mxu0  ;;  %3050 = vmatprep.mubr.msk.bf16.mxu1 %vm346_vm6, %v1612_v63 }
 0x2ec   :  { %vm1568_vm3 = vcmp.ge.f32.partialorder %v1518_v2, 0.0  ;;  %v1584_v7 = vmul.f32 0.01, %v1518_v2  ;;  %v1521_v8 = vadd.f32 %v3560_v38, %v1520_v28  ;;  %3051 = vmatmul.mubr.msk.bf16.vlgmr.msra.gmra.mrb[52].mxu1 %vm346_vm6, %v1613_v60  ;;  %v1963_v28 = vsel %vm530_vm1, %v2754_v1, 0 }
 0x2ed   :  { %v1602_v9 = vsel %vm1570_vm2, %v1526_v0, %v1586_v5  ;;  %vm1571_vm4 = vcmp.ge.f32.partialorder %v1529_v6, 0.0  ;;  %v1587_v10 = vmul.f32 0.01, %v1529_v6  ;;  %3067 = vmatpush3.bf16.msra.mxu1 %v1816_v4  ;;  %v2752_v5 = vld [vmem:[%s3753_s11 + $0x8] sm:$0xf] }
 0x2ee   :  { %v1600_v11 = vsel %vm1568_vm3, %v1518_v2, %v1584_v7  ;;  %vm1569_vm7 = vcmp.ge.f32.partialorder %v1521_v8, 0.0  ;;  %v1585_v12 = vmul.f32 0.01, %v1521_v8  ;;  %3078 = vmatprep.subr.bf16.mxu1 %v3190_v13 }
 0x2ef   :  { %v1603_v14 = vsel %vm1571_vm4, %v1529_v6, %v1587_v10 }
 0x2f0   :  { %v1615_v15 = vpack.c.bf16 %v1603_v14, %v1602_v9  ;;  %v1601_v17 = vsel %vm1569_vm7, %v1521_v8, %v1585_v12  ;;  %v3042_v18 = vpop.f32.mrb[52].mxu0  ;;  %v1912_v12 = vsel %vm530_vm1, %v2752_v5, 0  ;;  %v2768_v5 = vld [vmem:[%s3753_s11 + $0x28] sm:$0xf] }
 0x2f1   :  { %v1614_v19 = vpack.c.bf16 %v1601_v17, %v1600_v11  ;;  %v1542_v20 = vadd.f32 %v3042_v18, %v3560_v38  ;;  %v1533_v21 = vpop.f32.mrb[53].mxu0 }
 0x2f2   :  { %v1534_v22 = vadd.f32 %v3560_v38, %v1533_v21  ;;  %v3043_v23 = vpop.f32.mrb[54].mxu0 }
 0x2f3   :  { %3054 = vmatprep.mubr.msk.bf16.mxu1 %vm346_vm6, %v1614_v19  ;;  %vm1574_vm9 = vcmp.ge.f32.partialorder %v1542_v20, 0.0  ;;  %v1590_v24 = vmul.f32 0.01, %v1542_v20  ;;  %v1545_v25 = vadd.f32 %v3043_v23, %v3560_v38  ;;  %v1536_v26 = vpop.f32.mrb[55].mxu0  ;;  %v2756_v23 = vld [vmem:[%s3753_s11 + $0x10] sm:$0xf] }
 0x2f4   :  { %3055 = vmatmul.mubr.msk.bf16.gmra.mrb[56].mxu1 %vm346_vm6, %v1615_v15  ;;  %vm1572_vm10 = vcmp.ge.f32.partialorder %v1534_v22, 0.0  ;;  %v1588_v27 = vmul.f32 0.01, %v1534_v22  ;;  %v1537_v16 = vadd.f32 %v3560_v38, %v1536_v26 }
 0x2f5   :  { %v1606_v29 = vsel %vm1574_vm9, %v1542_v20, %v1590_v24  ;;  %vm1575_vm11 = vcmp.ge.f32.partialorder %v1545_v25, 0.0  ;;  %v1591_v30 = vmul.f32 0.01, %v1545_v25  ;;  %v2758_v20 = vld [vmem:[%s3753_s11 + $0x14] sm:$0xf] }
 0x2f6   :  { %v1604_v31 = vsel %vm1572_vm10, %v1534_v22, %v1588_v27  ;;  %vm1573_vm12 = vcmp.ge.f32.partialorder %v1537_v16, 0.0  ;;  %v1589_v32 = vmul.f32 0.01, %v1537_v16 }
 0x2f7   :  { %v1607_v33 = vsel %vm1575_vm11, %v1545_v25, %v1591_v30  ;;  %v2065_v25 = vsel %vm530_vm1, %v2758_v20, 0 }
 0x2f8   :  { %v1617_v34 = vpack.c.bf16 %v1607_v33, %v1606_v29  ;;  %v1605_v35 = vsel %vm1573_vm12, %v1537_v16, %v1589_v32  ;;  %v3046_v36 = vpop.f32.mrb[56].mxu0  ;;  %v2014_v29 = vsel %vm530_vm1, %v2756_v23, 0 }
 0x2f9   :  { %v1616_v37 = vpack.c.bf16 %v1605_v35, %v1604_v31  ;;  %v1558_v39 = vadd.f32 %v3046_v36, %v3560_v38  ;;  %v1549_v40 = vpop.f32.mrb[57].mxu0  ;;  %v2762_v36 = vld [vmem:[%s3753_s11 + $0x1c] sm:$0xf] }
 0x2fa   :  { %v1550_v41 = vadd.f32 %v3560_v38, %v1549_v40  ;;  %v3047_v42 = vpop.f32.mrb[58].mxu0  ;;  %v2760_v40 = vld [vmem:[%s3753_s11 + $0x18] sm:$0xf] }
 0x2fb   :  { %3058 = vmatprep.mubr.msk.bf16.mxu1 %vm346_vm6, %v1616_v37  ;;  %vm1578_vm0 = vcmp.ge.f32.partialorder %v1558_v39, 0.0  ;;  %v1594_v43 = vmul.f32 0.01, %v1558_v39  ;;  %v1561_v44 = vadd.f32 %v3047_v42, %v3560_v38  ;;  %v1552_v45 = vpop.f32.mrb[59].mxu0  ;;  %v2167_v42 = vsel %vm530_vm1, %v2762_v36, 0 }
 0x2fc   :  { %3059 = vmatmul.mubr.msk.bf16.gmra.mrb[60].mxu1 %vm346_vm6, %v1617_v34  ;;  %vm1576_vm13 = vcmp.ge.f32.partialorder %v1550_v41, 0.0  ;;  %v1592_v46 = vmul.f32 0.01, %v1550_v41  ;;  %v1553_v48 = vadd.f32 %v3560_v38, %v1552_v45  ;;  %v3598_v38 = vld [vmem:[%s3755_s10] ss:$0 sm:$0xff] }
 0x2fd   :  { %v1610_v49 = vsel %vm1578_vm0, %v1558_v39, %v1594_v43  ;;  %vm1579_vm14 = vcmp.ge.f32.partialorder %v1561_v44, 0.0  ;;  %v1595_v50 = vmul.f32 0.01, %v1561_v44 }
 0x2fe   :  { %v1608_v51 = vsel %vm1576_vm13, %v1550_v41, %v1592_v46  ;;  %vm1577_vm15 = vcmp.ge.f32.partialorder %v1553_v48, 0.0  ;;  %v1593_v52 = vmul.f32 0.01, %v1553_v48  ;;  %v2116_v46 = vsel %vm530_vm1, %v2760_v40, 0 }
 0x2ff   :  { %v1611_v53 = vsel %vm1579_vm14, %v1561_v44, %v1595_v50 }
 0x300   :  { %v1619_v54 = vpack.c.bf16 %v1611_v53, %v1610_v49  ;;  %v1609_v55 = vsel %vm1577_vm15, %v1553_v48, %v1593_v52 }
 0x301   :  { %v1618_v56 = vpack.c.bf16 %v1609_v55, %v1608_v51 }
 0x303   :  { %3062 = vmatprep.mubr.msk.bf16.mxu1 %vm346_vm6, %v1618_v56 }
 0x304   :  { %3063 = vmatmul.mubr.msk.bf16.gmra.mrb[64].mxu1 %vm346_vm6, %v1619_v54  ;;  %v2766_v54 = vld [vmem:[%s3753_s11 + $0x24] sm:$0xf] }
 0x305   :  { %3068 = vmatprep.mubr.msk.bf16.mxu1 %vm3191_vm5, %v3190_v13 }
 0x3bf   :  { %v3052_v57 = vpop.f32.mrb[52].mxu1 }
 0x3c0   :  { %v1693_v58 = vpop.f32.mrb[53].mxu1  ;;  %v1702_v2 = vadd.f32 %v3052_v57, %v3598_v38  ;;  %v2764_v57 = vld [vmem:[%s3753_s11 + $0x20] sm:$0xf] }
 0x3c1   :  { %v1694_v59 = vadd.f32 %v3598_v38, %v1693_v58  ;;  %v3053_v60 = vpop.f32.mrb[54].mxu1 }
 0x3c2   :  { %v1696_v61 = vpop.f32.mrb[55].mxu1  ;;  %v1705_v63 = vadd.f32 %v3053_v60, %v3598_v38  ;;  %v1774_v14 = vmul.f32 0.01, %v1702_v2  ;;  %vm1758_vm4 = vcmp.ge.f32.partialorder %v1702_v2, 0.0 }
 0x3c3   :  { %vm1756_vm2 = vcmp.ge.f32.partialorder %v1694_v59, 0.0  ;;  %v1772_v62 = vmul.f32 0.01, %v1694_v59  ;;  %v1697_v0 = vadd.f32 %v3598_v38, %v1696_v61 }
 0x3c4   :  { %v1775_v7 = vmul.f32 0.01, %v1705_v63  ;;  %vm1759_vm3 = vcmp.ge.f32.partialorder %v1705_v63, 0.0  ;;  %v1790_v21 = vsel %vm1758_vm4, %v1702_v2, %v1774_v14  ;;  %v2770_v2 = vld [vmem:[%s3753_s11 + $0x2c] sm:$0xf] }
 0x3c5   :  { %v1788_v3 = vsel %vm1756_vm2, %v1694_v59, %v1772_v62  ;;  %vm1757_vm6 = vcmp.ge.f32.partialorder %v1697_v0, 0.0  ;;  %v1773_v4 = vmul.f32 0.01, %v1697_v0  ;;  %v1904_v16 = vpack.c.bf16 %v1790_v21, %v1790_v21  ;;  %v2774_v14 = vld [vmem:[%s3753_s11 + $0x34] sm:$0xf] }
 0x3c6   :  { %v1804_v6 = vpack.c.bf16 %v1788_v3, %v1788_v3  ;;  %v1791_v18 = vsel %vm1759_vm3, %v1705_v63, %v1775_v7  ;;  %v2269_v59 = vsel %vm530_vm1, %v2766_v54, 0  ;;  %v2218_v62 = vsel %vm530_vm1, %v2764_v57, 0 }
 0x3c7   :  { %v1789_v8 = vsel %vm1757_vm6, %v1697_v0, %v1773_v4  ;;  %v3056_v9 = vpop.f32.mrb[56].mxu1  ;;  %v1955_v24 = vpack.c.bf16 %v1791_v18, %v1791_v18  ;;  %v2772_v18 = vld [vmem:[%s3753_s11 + $0x30] sm:$0xf]  ;;  %v2473_v20 = vsel %vm530_vm1, %v2774_v14, 0 }
 0x3c8   :  { %v1808_v10 = vpack.c.bf16 %v1789_v8, %v1789_v8  ;;  %v1709_v11 = vpop.f32.mrb[57].mxu1  ;;  %3075 = vmatmul.mubr.msk.bf16.vlgmr.msra.gmra.mrb[60].mxu0 %vm526_vm8, %v1804_v6  ;;  %v1718_v37 = vadd.f32 %v3056_v9, %v3598_v38  ;;  %v2320_v9 = vsel %vm530_vm1, %v2768_v5, 0  ;;  %v2422_v23 = vsel %vm530_vm1, %v2772_v18, 0 }
 0x3c9   :  { %v3057_v15 = vpop.f32.mrb[58].mxu1  ;;  %3085 = vmatpush3.bf16.msra.mxu0 %v1963_v28  ;;  %3086 = vmatprep.mubr.msk.bf16.mxu0 %vm3191_vm5, %v3190_v13  ;;  %v1710_v22 = vadd.f32 %v3598_v38, %v1709_v11  ;;  %v2371_v28 = vsel %vm530_vm1, %v2770_v2, 0 }
 0x3ca   :  { %v1712_v17 = vpop.f32.mrb[59].mxu1  ;;  %3069 = vmatmul.mubr.msk.bf16.vlgmr.msra.gmra.mrb[68].mxu1 %vm526_vm8, %v1808_v10  ;;  %3096 = vmatprep.subr.bf16.mxu0 %v3190_v13  ;;  %v1721_v34 = vadd.f32 %v3057_v15, %v3598_v38  ;;  %v1778_v49 = vmul.f32 0.01, %v1718_v37  ;;  %vm1762_vm11 = vcmp.ge.f32.partialorder %v1718_v37, 0.0 }
 0x3cb   :  { %v1713_v19 = vadd.f32 %v3598_v38, %v1712_v17  ;;  %3079 = vmatpush3.bf16.msra.mxu1 %v1912_v12  ;;  %3080 = vmatprep.mubr.msk.bf16.mxu1 %vm3191_vm5, %v3190_v13  ;;  %v1776_v31 = vmul.f32 0.01, %v1710_v22  ;;  %vm1760_vm9 = vcmp.ge.f32.partialorder %v1710_v22, 0.0 }
 0x3cc   :  { %3090 = vmatprep.subr.bf16.mxu1 %v3190_v13  ;;  %v1779_v43 = vmul.f32 0.01, %v1721_v34  ;;  %vm1763_vm10 = vcmp.ge.f32.partialorder %v1721_v34, 0.0  ;;  %v1794_v55 = vsel %vm1762_vm11, %v1718_v37, %v1778_v49 }
 0x3cd   :  { %v1777_v26 = vmul.f32 0.01, %v1713_v19  ;;  %vm1761_vm7 = vcmp.ge.f32.partialorder %v1713_v19, 0.0  ;;  %v1792_v39 = vsel %vm1760_vm9, %v1710_v22, %v1776_v31  ;;  %v2108_v61 = vpack.c.bf16 %v1794_v55, %v1794_v55 }
 0x3ce   :  { %v2006_v45 = vpack.c.bf16 %v1792_v39, %v1792_v39  ;;  %v1795_v52 = vsel %vm1763_vm10, %v1721_v34, %v1779_v43 }
 0x3cf   :  { %v3629_v27 = vpop.f32.mrb[60].mxu1  ;;  %v1793_v35 = vsel %vm1761_vm7, %v1713_v19, %v1777_v26  ;;  %v2159_v58 = vpack.c.bf16 %v1795_v52, %v1795_v52 }
 0x3d0   :  { %3087 = vmatmul.mubr.msk.bf16.vlgmr.msra.gmra.mrb[64].mxu0 %vm526_vm8, %v1955_v24  ;;  %v1725_v30 = vpop.f32.mrb[61].mxu1  ;;  %v2057_v41 = vpack.c.bf16 %v1793_v35, %v1793_v35  ;;  %v1734_v3 = vadd.f32 %v3629_v27, %v3598_v38  ;;  %v2778_v27 = vld [vmem:[%s3753_s11 + $0x3c] sm:$0xf] }
 0x3d1   :  { %3097 = vmatpush3.bf16.msra.mxu0 %v2065_v25  ;;  %3098 = vmatprep.mubr.msk.bf16.mxu0 %vm3191_vm5, %v3190_v13  ;;  %v3061_v32 = vpop.f32.mrb[62].mxu1  ;;  %v1726_v56 = vadd.f32 %v3598_v38, %v1725_v30  ;;  %v2776_v30 = vld [vmem:[%s3753_s11 + $0x38] sm:$0xf] }
 0x3d2   :  { %3081 = vmatmul.mubr.msk.bf16.vlgmr.msra.gmra.mrb[72].mxu1 %vm526_vm8, %v1904_v16  ;;  %v1728_v33 = vpop.f32.mrb[63].mxu1  ;;  %3108 = vmatprep.subr.bf16.mxu0 %v3190_v13  ;;  %v1737_v0 = vadd.f32 %v3061_v32, %v3598_v38  ;;  %v1782_v10 = vmul.f32 0.01, %v1734_v3  ;;  %vm1766_vm14 = vcmp.ge.f32.partialorder %v1734_v3, 0.0  ;;  %v2575_v32 = vsel %vm530_vm1, %v2778_v27, 0 }
 0x3d3   :  { %3091 = vmatpush3.bf16.msra.mxu1 %v2014_v29  ;;  %3092 = vmatprep.mubr.msk.bf16.mxu1 %vm3191_vm5, %v3190_v13  ;;  %v1729_v53 = vadd.f32 %v3598_v38, %v1728_v33  ;;  %v1780_v63 = vmul.f32 0.01, %v1726_v56  ;;  %vm1764_vm0 = vcmp.ge.f32.partialorder %v1726_v56, 0.0  ;;  %v2524_v35 = vsel %vm530_vm1, %v2776_v30, 0 }
 0x3d4   :  { %3102 = vmatprep.subr.bf16.mxu1 %v3190_v13  ;;  %v1783_v7 = vmul.f32 0.01, %v1737_v0  ;;  %vm1767_vm13 = vcmp.ge.f32.partialorder %v1737_v0, 0.0  ;;  %v1798_v15 = vsel %vm1766_vm14, %v1734_v3, %v1782_v10 }
 0x3d5   :  { %v1781_v60 = vmul.f32 0.01, %v1729_v53  ;;  %vm1765_vm12 = vcmp.ge.f32.partialorder %v1729_v53, 0.0  ;;  %v1796_v4 = vsel %vm1764_vm0, %v1726_v56, %v1780_v63  ;;  %v2312_v22 = vpack.c.bf16 %v1798_v15, %v1798_v15 }
 0x3d6   :  { %v2210_v8 = vpack.c.bf16 %v1796_v4, %v1796_v4  ;;  %v1799_v11 = vsel %vm1767_vm13, %v1737_v0, %v1783_v7 }
 0x3d7   :  { %v3649_v44 = vpop.f32.mrb[64].mxu1  ;;  %v1797_v1 = vsel %vm1765_vm12, %v1729_v53, %v1781_v60  ;;  %v2363_v19 = vpack.c.bf16 %v1799_v11, %v1799_v11 }
 0x3d8   :  { %3099 = vmatmul.mubr.msk.bf16.vlgmr.msra.gmra.mrb[68].mxu0 %vm526_vm8, %v2057_v41  ;;  %v1741_v48 = vpop.f32.mrb[65].mxu1  ;;  %v2261_v6 = vpack.c.bf16 %v1797_v1, %v1797_v1  ;;  %v1750_v16 = vadd.f32 %v3649_v44, %v3598_v38 }
 0x3d9   :  { %3109 = vmatpush3.bf16.msra.mxu0 %v2167_v42  ;;  %3110 = vmatprep.mubr.msk.bf16.mxu0 %vm3191_vm5, %v3190_v13  ;;  %v3655_v50 = vpop.f32.mrb[66].mxu1  ;;  %v1742_v17 = vadd.f32 %v3598_v38, %v1741_v48 }
 0x3da   :  { %3093 = vmatmul.mubr.msk.bf16.vlgmr.msra.gmra.mrb[76].mxu1 %vm526_vm8, %v2006_v45  ;;  %3120 = vmatprep.subr.bf16.mxu0 %v3190_v13  ;;  %v1744_v51 = vpop.f32.mrb[67].mxu1  ;;  %v1753_v25 = vadd.f32 %v3655_v50, %v3598_v38  ;;  %v1786_v36 = vmul.f32 0.01, %v1750_v16  ;;  %vm1770_vm3 = vcmp.ge.f32.partialorder %v1750_v16, 0.0 }
 0x3db   :  { %3103 = vmatpush3.bf16.msra.mxu1 %v2116_v46  ;;  %3104 = vmatprep.mubr.msk.bf16.mxu1 %vm3191_vm5, %v3190_v13  ;;  %v1745_v12 = vadd.f32 %v3598_v38, %v1744_v51  ;;  %v1784_v24 = vmul.f32 0.01, %v1742_v17  ;;  %vm1768_vm2 = vcmp.ge.f32.partialorder %v1742_v17, 0.0 }
 0x3dc   :  { %3114 = vmatprep.subr.bf16.mxu1 %v3190_v13  ;;  %v1787_v33 = vmul.f32 0.01, %v1753_v25  ;;  %vm1771_vm6 = vcmp.ge.f32.partialorder %v1753_v25, 0.0  ;;  %v1802_v37 = vsel %vm1770_vm3, %v1750_v16, %v1786_v36 }
 0x3dd   :  { %v1785_v21 = vmul.f32 0.01, %v1745_v12  ;;  %vm1769_vm15 = vcmp.ge.f32.partialorder %v1745_v12, 0.0  ;;  %v1800_v29 = vsel %vm1768_vm2, %v1742_v17, %v1784_v24  ;;  %v2516_v40 = vpack.c.bf16 %v1802_v37, %v1802_v37 }
 0x3de   :  { %v2414_v34 = vpack.c.bf16 %v1800_v29, %v1800_v29  ;;  %v1803_v38 = vsel %vm1771_vm6, %v1753_v25, %v1787_v33 }
 0x3df   :  { %v1801_v26 = vsel %vm1769_vm15, %v1745_v12, %v1785_v21  ;;  %v2567_v39 = vpack.c.bf16 %v1803_v38, %v1803_v38 }
 0x3e0   :  { %3111 = vmatmul.mubr.msk.bf16.vlgmr.msra.gmra.mrb[72].mxu0 %vm526_vm8, %v2159_v58  ;;  %v2465_v31 = vpack.c.bf16 %v1801_v26, %v1801_v26 }
 0x3e1   :  { %3121 = vmatpush3.bf16.msra.mxu0 %v2269_v59  ;;  %3122 = vmatprep.mubr.msk.bf16.mxu0 %vm3191_vm5, %v3190_v13 }
 0x3e2   :  { %3105 = vmatmul.mubr.msk.bf16.vlgmr.msra.gmra.mrb[80].mxu1 %vm526_vm8, %v2108_v61  ;;  %3132 = vmatprep.subr.bf16.mxu0 %v3190_v13 }
 0x3e3   :  { %3115 = vmatpush3.bf16.msra.mxu1 %v2218_v62  ;;  %3116 = vmatprep.mubr.msk.bf16.mxu1 %vm3191_vm5, %v3190_v13 }
 0x3e4   :  { %3126 = vmatprep.subr.bf16.mxu1 %v3190_v13 }
 0x3e8   :  { %3123 = vmatmul.mubr.msk.bf16.vlgmr.msra.gmra.mrb[76].mxu0 %vm526_vm8, %v2261_v6 }
 0x3e9   :  { %3133 = vmatpush3.bf16.msra.mxu0 %v2371_v28  ;;  %3134 = vmatprep.mubr.msk.bf16.mxu0 %vm3191_vm5, %v3190_v13 }
 0x3ea   :  { %3117 = vmatmul.mubr.msk.bf16.vlgmr.msra.gmra.mrb[84].mxu1 %vm526_vm8, %v2210_v8  ;;  %3144 = vmatprep.subr.bf16.mxu0 %v3190_v13 }
 0x3eb   :  { %3127 = vmatpush3.bf16.msra.mxu1 %v2320_v9  ;;  %3128 = vmatprep.mubr.msk.bf16.mxu1 %vm3191_vm5, %v3190_v13 }
 0x3ec   :  { %3138 = vmatprep.subr.bf16.mxu1 %v3190_v13 }
 0x3f0   :  { %3135 = vmatmul.mubr.msk.bf16.vlgmr.msra.gmra.mrb[80].mxu0 %vm526_vm8, %v2363_v19 }
 0x3f1   :  { %3145 = vmatpush3.bf16.msra.mxu0 %v2473_v20  ;;  %3146 = vmatprep.mubr.msk.bf16.mxu0 %vm3191_vm5, %v3190_v13 }
 0x3f2   :  { %3129 = vmatmul.mubr.msk.bf16.vlgmr.msra.gmra.mrb[88].mxu1 %vm526_vm8, %v2312_v22  ;;  %3156 = vmatprep.subr.bf16.mxu0 %v3190_v13 }
 0x3f3   :  { %3139 = vmatpush3.bf16.msra.mxu1 %v2422_v23  ;;  %3140 = vmatprep.mubr.msk.bf16.mxu1 %vm3191_vm5, %v3190_v13 }
 0x3f4   :  { %3150 = vmatprep.subr.bf16.mxu1 %v3190_v13 }
 0x3f8   :  { %3147 = vmatmul.mubr.msk.bf16.vlgmr.msra.gmra.mrb[84].mxu0 %vm526_vm8, %v2465_v31 }
 0x3f9   :  { %3157 = vmatpush3.bf16.msra.mxu0 %v2575_v32  ;;  %3158 = vmatprep.mubr.msk.bf16.mxu0 %vm3191_vm5, %v3190_v13 }
 0x3fa   :  { %3141 = vmatmul.mubr.msk.bf16.vlgmr.msra.gmra.mrb[92].mxu1 %vm526_vm8, %v2414_v34 }
 0x3fb   :  { %3151 = vmatpush3.bf16.msra.mxu1 %v2524_v35  ;;  %3152 = vmatprep.mubr.msk.bf16.mxu1 %vm3191_vm5, %v3190_v13 }
 0x400   :  { %3159 = vmatmul.mubr.msk.bf16.vlgmr.msra.gmra.mrb[88].mxu0 %vm526_vm8, %v2567_v39 }
 0x402   :  { %3153 = vmatmul.mubr.msk.bf16.vlgmr.msra.gmra.mrb[96].mxu1 %vm526_vm8, %v2516_v40 }
 0x49b   :  { %v1898_v41 = vpop.f32.mrb[60].mxu0 }
 0x49c   :  { %v3076_v42 = vpop.f32.mrb[61].mxu0 }
 0x49d   :  { %v1852_v43 = vpop.f32.mrb[68].mxu1  ;;  %v1901_v44 = vpop.f32.mrb[62].mxu0 }
 0x49e   :  { %v1899_v45 = vadd.f32 %v1898_v41, %v1852_v43  ;;  %v3070_v46 = vpop.f32.mrb[69].mxu1  ;;  %v3077_v48 = vpop.f32.mrb[63].mxu0 }
 0x49f   :  { %v1855_v49 = vpop.f32.mrb[70].mxu1 }
 0x4a0   :  { %v3071_v50 = vpop.f32.mrb[71].mxu1 }
 0x4a3   :  { %v1999_v51 = vpop.f32.mrb[64].mxu0 }
 0x4a4   :  { %v3088_v52 = vpop.f32.mrb[65].mxu0 }
 0x4a5   :  { %v1948_v53 = vpop.f32.mrb[72].mxu1  ;;  %v2002_v13 = vpop.f32.mrb[66].mxu0 }
 0x4a6   :  { %v1954_v54 = vadd.f32 %v1948_v53, %v1899_v45  ;;  %v3082_v55 = vpop.f32.mrb[73].mxu1  ;;  %v3089_v56 = vpop.f32.mrb[67].mxu0 }
 0x4a7   :  { %v1951_v57 = vpop.f32.mrb[74].mxu1 }
 0x4a8   :  { %v3083_v58 = vpop.f32.mrb[75].mxu1  ;;  %v2005_v59 = vadd.f32 %v1999_v51, %v1954_v54  ;;  %v2655_v57 = vld [vmem:[%s3756_s12] ss:$0 sm:$0xff] }
 0x4ab   :  { %v2101_v60 = vpop.f32.mrb[68].mxu0 }
 0x4ac   :  { %v3100_v61 = vpop.f32.mrb[69].mxu0 }
 0x4ad   :  { %v2050_v62 = vpop.f32.mrb[76].mxu1  ;;  %v2104_v63 = vpop.f32.mrb[70].mxu0 }
 0x4ae   :  { %v2056_v0 = vadd.f32 %v2050_v62, %v2005_v59  ;;  %v3094_v1 = vpop.f32.mrb[77].mxu1  ;;  %v3101_v2 = vpop.f32.mrb[71].mxu0 }
 0x4af   :  { %v2053_v3 = vpop.f32.mrb[78].mxu1 }
 0x4b0   :  { %v3095_v4 = vpop.f32.mrb[79].mxu1  ;;  %v2107_v5 = vadd.f32 %v2101_v60, %v2056_v0 }
 0x4b3   :  { %v2203_v6 = vpop.f32.mrb[72].mxu0 }
 0x4b4   :  { %v3112_v28 = vpop.f32.mrb[73].mxu0 }
 0x4b5   :  { %v2152_v7 = vpop.f32.mrb[80].mxu1  ;;  %v2206_v8 = vpop.f32.mrb[74].mxu0 }
 0x4b6   :  { %v2158_v9 = vadd.f32 %v2152_v7, %v2107_v5  ;;  %v3106_v10 = vpop.f32.mrb[81].mxu1  ;;  %v3113_v11 = vpop.f32.mrb[75].mxu0 }
 0x4b7   :  { %v2155_v12 = vpop.f32.mrb[82].mxu1 }
 0x4b8   :  { %v3107_v14 = vpop.f32.mrb[83].mxu1  ;;  %v2209_v15 = vadd.f32 %v2203_v6, %v2158_v9 }
 0x4bb   :  { %v2305_v17 = vpop.f32.mrb[76].mxu0 }
 0x4bc   :  { %v3124_v18 = vpop.f32.mrb[77].mxu0 }
 0x4bd   :  { %v2254_v19 = vpop.f32.mrb[84].mxu1  ;;  %v2308_v20 = vpop.f32.mrb[78].mxu0 }
 0x4be   :  { %v2260_v21 = vadd.f32 %v2254_v19, %v2209_v15  ;;  %v3118_v22 = vpop.f32.mrb[85].mxu1  ;;  %v3125_v23 = vpop.f32.mrb[79].mxu0 }
 0x4bf   :  { %v2257_v24 = vpop.f32.mrb[86].mxu1 }
 0x4c0   :  { %v3119_v25 = vpop.f32.mrb[87].mxu1  ;;  %v2311_v26 = vadd.f32 %v2305_v17, %v2260_v21 }
 0x4c3   :  { %v2407_v27 = vpop.f32.mrb[80].mxu0 }
 0x4c4   :  { %v3136_v16 = vpop.f32.mrb[81].mxu0 }
 0x4c5   :  { %v2356_v29 = vpop.f32.mrb[88].mxu1  ;;  %v2410_v30 = vpop.f32.mrb[82].mxu0 }
 0x4c6   :  { %v2362_v31 = vadd.f32 %v2356_v29, %v2311_v26  ;;  %v3130_v32 = vpop.f32.mrb[89].mxu1  ;;  %v3137_v33 = vpop.f32.mrb[83].mxu0 }
 0x4c7   :  { %v2359_v34 = vpop.f32.mrb[90].mxu1 }
 0x4c8   :  { %v3131_v35 = vpop.f32.mrb[91].mxu1  ;;  %v2413_v36 = vadd.f32 %v2407_v27, %v2362_v31 }
 0x4cb   :  { %v2509_v38 = vpop.f32.mrb[84].mxu0 }
 0x4cc   :  { %v3148_v37 = vpop.f32.mrb[85].mxu0 }
 0x4cd   :  { %v2458_v39 = vpop.f32.mrb[92].mxu1  ;;  %v2512_v40 = vpop.f32.mrb[86].mxu0 }
 0x4ce   :  { %v2464_v41 = vadd.f32 %v2458_v39, %v2413_v36  ;;  %v3142_v42 = vpop.f32.mrb[93].mxu1  ;;  %v3149_v43 = vpop.f32.mrb[87].mxu0 }
 0x4cf   :  { %v2461_v44 = vpop.f32.mrb[94].mxu1 }
 0x4d0   :  { %v3143_v45 = vpop.f32.mrb[95].mxu1  ;;  %v2515_v46 = vadd.f32 %v2509_v38, %v2464_v41 }
 0x4d3   :  { %v2611_v48 = vpop.f32.mrb[88].mxu0 }
 0x4d4   :  { %v3160_v49 = vpop.f32.mrb[89].mxu0 }
 0x4d5   :  { %v2560_v50 = vpop.f32.mrb[96].mxu1  ;;  %v2614_v51 = vpop.f32.mrb[90].mxu0 }
 0x4d6   :  { %v2566_v52 = vadd.f32 %v2560_v50, %v2515_v46  ;;  %v3154_v53 = vpop.f32.mrb[97].mxu1  ;;  %v3161_v13 = vpop.f32.mrb[91].mxu0 }
 0x4d7   :  { %v2563_v54 = vpop.f32.mrb[98].mxu1 }
 0x4d8   :  { %v2617_v55 = vadd.f32 %v2611_v48, %v2566_v52  ;;  %v3155_v56 = vpop.f32.mrb[99].mxu1 }
 0x4da   :  { %v2618_v58 = vadd.f32 %v2617_v55, %v3565_v47 }
 0x4dc   :  { %v2619_v59 = vadd.f32 %v2655_v57, %v2618_v58 }
 0x4de   :  { %2620 = vst [vmem:[%s3757_s13] sm:$0xff] %v2619_v59 }

</bundles_post_ra>
